<compile_context>
chip_gen: v5e
topology: v5e:2x2
jax: 0.10.0
libtpu: 0.0.40
codegen_flags: <defaults>
</compile_context>

<pallas_src>
import math

import jax
import jax.numpy as jnp
from jax.experimental import pallas as pl
from jax.experimental.pallas import tpu as pltpu

NHEAD = 4
LN_EPS = 1e-5


def encoder_kernel(x_ref, pe_ref, wqkv_ref, bqkv_ref, wo_ref, bo_ref,
                   g1_ref, be1_ref, w1_ref, bf1_ref, w2_ref, bf2_ref,
                   g2_ref, be2_ref, o_ref):
    _, S, D = x_ref.shape
    H = NHEAD
    hd = D // H
    scale = 1.0 / math.sqrt(hd)

    # --- positional encoding (f32, one broadcast add) ---
    x = x_ref[0] + pe_ref[...]                                            # [S, D]

    # --- fused QKV projection (bf16 MXU, f32 accumulation) ---
    x_bf = x.astype(jnp.bfloat16)
    qkv = jnp.dot(x_bf, wqkv_ref[...],
                  preferred_element_type=jnp.float32) + bqkv_ref[...]     # [S, 3D]
    qkv_bf = qkv.astype(jnp.bfloat16)

    # --- multi-head self-attention (heads unrolled, lane-slice only, no transposes) ---
    ctx_heads = []
    for h in range(H):
        qh = qkv_bf[:, h * hd:(h + 1) * hd]                               # [S, hd]
        kh = qkv_bf[:, D + h * hd:D + (h + 1) * hd]
        vh = qkv_bf[:, 2 * D + h * hd:2 * D + (h + 1) * hd]

        scores = jnp.einsum('qe,ke->qk', qh, kh,
                            preferred_element_type=jnp.float32) * scale   # [S, S] f32
        m = jnp.max(scores, axis=-1, keepdims=True)
        p = jnp.exp(scores - m)
        denom = jnp.sum(p, axis=-1, keepdims=True)
        attn = p * pl.reciprocal(denom, approx=True)                      # EUP
        ctx_h = jnp.dot(attn.astype(jnp.bfloat16), vh,
                        preferred_element_type=jnp.float32)               # [S, hd]
        ctx_heads.append(ctx_h)
    ctx = jnp.concatenate(ctx_heads, axis=-1)                             # [S, D] f32

    # --- fused output projection ---
    attn_out = jnp.dot(ctx.astype(jnp.bfloat16), wo_ref[...],
                       preferred_element_type=jnp.float32) + bo_ref[...]  # [S, D]

    # --- residual + LayerNorm 1 (f32) ---
    y = x + attn_out
    mu = jnp.mean(y, axis=-1, keepdims=True)
    var = jnp.mean((y - mu) ** 2, axis=-1, keepdims=True)
    y = (y - mu) * jax.lax.rsqrt(var + LN_EPS) * g1_ref[...] + be1_ref[...]

    # --- feed-forward: Linear -> ReLU -> Linear (bf16 MXU, f32 elementwise) ---
    h1 = jnp.dot(y.astype(jnp.bfloat16), w1_ref[...],
                 preferred_element_type=jnp.float32) + bf1_ref[...]       # [S, FF]
    h1 = jnp.maximum(h1, 0.0)
    h2 = jnp.dot(h1.astype(jnp.bfloat16), w2_ref[...],
                 preferred_element_type=jnp.float32) + bf2_ref[...]       # [S, D]

    # --- residual + LayerNorm 2 (f32) ---
    z = y + h2
    mu2 = jnp.mean(z, axis=-1, keepdims=True)
    var2 = jnp.mean((z - mu2) ** 2, axis=-1, keepdims=True)
    z = (z - mu2) * jax.lax.rsqrt(var2 + LN_EPS) * g2_ref[...] + be2_ref[...]

    o_ref[0] = z


def make_positional_encoding(seq_len, d_model):
    """Same construction as PositionalEncoding.__init__ (first seq_len rows)."""
    position = jnp.arange(seq_len, dtype=jnp.float32)[:, None]            # [S, 1]
    div_term = jnp.exp(jnp.arange(0, d_model, 2, dtype=jnp.float32)
                       * (-math.log(10000.0) / d_model))                  # [D/2]
    ang = position * div_term                                             # [S, D/2]
    pe = jnp.stack([jnp.sin(ang), jnp.cos(ang)], axis=-1).reshape(seq_len, d_model)
    return pe.astype(jnp.float32)                                         # [S, D]


def init_params(d_model, dim_feedforward=2048, seed=0):
    """Deterministic synthetic parameters with the same shapes as the PyTorch module."""
    keys = jax.random.split(jax.random.PRNGKey(seed), 6)
    s = 0.05
    p = {
        'wqkv': s * jax.random.normal(keys[0], (3 * d_model, d_model), jnp.float32),
        'bqkv': jnp.zeros((1, 3 * d_model), jnp.float32),
        'wo':   s * jax.random.normal(keys[1], (d_model, d_model), jnp.float32),
        'bo':   jnp.zeros((1, d_model), jnp.float32),
        'g1':   jnp.ones((1, d_model), jnp.float32),
        'be1':  jnp.zeros((1, d_model), jnp.float32),
        'w1':   s * jax.random.normal(keys[2], (dim_feedforward, d_model), jnp.float32),
        'bf1':  jnp.zeros((1, dim_feedforward), jnp.float32),
        'w2':   s * jax.random.normal(keys[3], (d_model, dim_feedforward), jnp.float32),
        'bf2':  jnp.zeros((1, d_model), jnp.float32),
        'g2':   jnp.ones((1, d_model), jnp.float32),
        'be2':  jnp.zeros((1, d_model), jnp.float32),
    }
    return p


def encoder_forward(tgt, params):
    S, B, D = tgt.shape
    FF = params['w1'].shape[0]
    pe = make_positional_encoding(S, D)                                   # [S, D]

    # Weight layout plumbing in the wrapper: pre-transpose + bf16 cast so the
    # kernel never does `.T` on a VMEM tile and the MXU runs in bf16.
    wqkv_t = params['wqkv'].T.astype(jnp.bfloat16)                        # [D, 3D]
    wo_t = params['wo'].T.astype(jnp.bfloat16)                            # [D, D]
    w1_t = params['w1'].T.astype(jnp.bfloat16)                            # [D, FF]
    w2_t = params['w2'].T.astype(jnp.bfloat16)                            # [FF, D]

    # Batch-major layout inside the kernel (one transpose here, one back).
    x_bsd = jnp.transpose(tgt, (1, 0, 2))                                 # [B, S, D]

    def const_spec(shape):
        nd = len(shape)
        return pl.BlockSpec(shape, lambda b, _nd=nd: (0,) * _nd)

    out = pl.pallas_call(
        encoder_kernel,
        out_shape=jax.ShapeDtypeStruct((B, S, D), jnp.float32),
        grid=(B,),
        in_specs=[
            pl.BlockSpec((1, S, D), lambda b: (b, 0, 0)),   # x (streams per batch)
            const_spec((S, D)),                             # pe        (resident)
            const_spec((D, 3 * D)),                         # wqkv_t    (resident)
            const_spec((1, 3 * D)),                         # bqkv
            const_spec((D, D)),                             # wo_t
            const_spec((1, D)),                             # bo
            const_spec((1, D)),                             # g1
            const_spec((1, D)),                             # be1
            const_spec((D, FF)),                            # w1_t
            const_spec((1, FF)),                            # bf1
            const_spec((FF, D)),                            # w2_t
            const_spec((1, D)),                             # bf2
            const_spec((1, D)),                             # g2
            const_spec((1, D)),                             # be2
        ],
        out_specs=pl.BlockSpec((1, S, D), lambda b: (b, 0, 0)),
        compiler_params=pltpu.CompilerParams(
            dimension_semantics=("parallel",)),
    )(x_bsd, pe, wqkv_t, params['bqkv'], wo_t, params['bo'],
      params['g1'], params['be1'], w1_t, params['bf1'],
      w2_t, params['bf2'], params['g2'], params['be2'])

    return jnp.transpose(out, (1, 0, 2))                                  # [S, B, D]


if __name__ == "__main__":
    SEQ, BATCH, D_MODEL = 8, 2, 32
    key = jax.random.PRNGKey(0)
    tgt = jax.random.normal(key, (SEQ, BATCH, D_MODEL), jnp.float32)

    params = init_params(D_MODEL)
    out = encoder_forward(tgt, params)
    out = jax.block_until_ready(out)

    assert out.shape == (SEQ, BATCH, D_MODEL)
    assert bool(jnp.all(jnp.isfinite(out)))
    print("KERNEL_OK")
</pallas_src>

<mosaic_0001>
module attributes {stable_mosaic.version = 11 : i64} {
  func.func @encoder_kernel(%arg0: i32, %arg1: memref<1x8x32xf32, #tpu.memory_space<vmem>>, %arg2: memref<8x32xf32, #tpu.memory_space<vmem>>, %arg3: memref<32x96xbf16, #tpu.memory_space<vmem>>, %arg4: memref<1x96xf32, #tpu.memory_space<vmem>>, %arg5: memref<32x32xbf16, #tpu.memory_space<vmem>>, %arg6: memref<1x32xf32, #tpu.memory_space<vmem>>, %arg7: memref<1x32xf32, #tpu.memory_space<vmem>>, %arg8: memref<1x32xf32, #tpu.memory_space<vmem>>, %arg9: memref<32x2048xbf16, #tpu.memory_space<vmem>>, %arg10: memref<1x2048xf32, #tpu.memory_space<vmem>>, %arg11: memref<2048x32xbf16, #tpu.memory_space<vmem>>, %arg12: memref<1x32xf32, #tpu.memory_space<vmem>>, %arg13: memref<1x32xf32, #tpu.memory_space<vmem>>, %arg14: memref<1x32xf32, #tpu.memory_space<vmem>>, %arg15: memref<1x8x32xf32, #tpu.memory_space<vmem>>) attributes {dimension_semantics = [#tpu.dimension_semantics<parallel>], iteration_bounds = array<i64: 2>, scalar_prefetch = 0 : i64, scratch_operands = 0 : i64, tpu.core_type = #tpu.core_type<tc>, window_params = [{transform_indices = @transform_0, window_bounds = array<i64: 1, 8, 32>}, {pipeline_mode = #tpu.pipeline_mode<synchronous>, transform_indices = @transform_1, window_bounds = array<i64: 8, 32>}, {pipeline_mode = #tpu.pipeline_mode<synchronous>, transform_indices = @transform_2, window_bounds = array<i64: 32, 96>}, {pipeline_mode = #tpu.pipeline_mode<synchronous>, transform_indices = @transform_3, window_bounds = array<i64: 1, 96>}, {pipeline_mode = #tpu.pipeline_mode<synchronous>, transform_indices = @transform_4, window_bounds = array<i64: 32, 32>}, {pipeline_mode = #tpu.pipeline_mode<synchronous>, transform_indices = @transform_5, window_bounds = array<i64: 1, 32>}, {pipeline_mode = #tpu.pipeline_mode<synchronous>, transform_indices = @transform_6, window_bounds = array<i64: 1, 32>}, {pipeline_mode = #tpu.pipeline_mode<synchronous>, transform_indices = @transform_7, window_bounds = array<i64: 1, 32>}, {pipeline_mode = #tpu.pipeline_mode<synchronous>, transform_indices = @transform_8, window_bounds = array<i64: 32, 2048>}, {pipeline_mode = #tpu.pipeline_mode<synchronous>, transform_indices = @transform_9, window_bounds = array<i64: 1, 2048>}, {pipeline_mode = #tpu.pipeline_mode<synchronous>, transform_indices = @transform_10, window_bounds = array<i64: 2048, 32>}, {pipeline_mode = #tpu.pipeline_mode<synchronous>, transform_indices = @transform_11, window_bounds = array<i64: 1, 32>}, {pipeline_mode = #tpu.pipeline_mode<synchronous>, transform_indices = @transform_12, window_bounds = array<i64: 1, 32>}, {pipeline_mode = #tpu.pipeline_mode<synchronous>, transform_indices = @transform_13, window_bounds = array<i64: 1, 32>}, {transform_indices = @transform_14, window_bounds = array<i64: 1, 8, 32>}]} {
    %c0 = arith.constant 0 : index
    %c0_0 = arith.constant 0 : index
    %c0_1 = arith.constant 0 : index
    %0 = vector.load %arg1[%c0, %c0_0, %c0_1] : memref<1x8x32xf32, #tpu.memory_space<vmem>>, vector<1x8x32xf32>
    %1 = vector.shape_cast %0 : vector<1x8x32xf32> to vector<8x32xf32>
    %c0_2 = arith.constant 0 : index
    %c0_3 = arith.constant 0 : index
    %2 = vector.load %arg2[%c0_2, %c0_3] : memref<8x32xf32, #tpu.memory_space<vmem>>, vector<8x32xf32>
    %3 = arith.addf %1, %2 : vector<8x32xf32>
    %4 = arith.truncf %3 : vector<8x32xf32> to vector<8x32xbf16>
    %c0_4 = arith.constant 0 : index
    %c0_5 = arith.constant 0 : index
    %5 = vector.load %arg3[%c0_4, %c0_5] : memref<32x96xbf16, #tpu.memory_space<vmem>>, vector<32x96xbf16>
    %cst = arith.constant dense<0.000000e+00> : vector<8x96xf32>
    %6 = tpu.matmul %4, %5, %cst {dimension_numbers = #tpu.dot_dimension_numbers<[1], [0], [0], [1], [0, 0, 1, 1], [], []>} : vector<8x32xbf16>, vector<32x96xbf16>, vector<8x96xf32> -> vector<8x96xf32>
    %c0_6 = arith.constant 0 : index
    %c0_7 = arith.constant 0 : index
    %7 = vector.load %arg4[%c0_6, %c0_7] : memref<1x96xf32, #tpu.memory_space<vmem>>, vector<1x96xf32>
    %8 = vector.broadcast %7 : vector<1x96xf32> to vector<8x96xf32>
    %9 = arith.addf %6, %8 : vector<8x96xf32>
    %10 = arith.truncf %9 : vector<8x96xf32> to vector<8x96xbf16>
    %11 = vector.extract_strided_slice %10 {offsets = [0, 0], sizes = [8, 8], strides = [1, 1]} : vector<8x96xbf16> to vector<8x8xbf16>
    %12 = vector.extract_strided_slice %10 {offsets = [0, 32], sizes = [8, 8], strides = [1, 1]} : vector<8x96xbf16> to vector<8x8xbf16>
    %13 = vector.extract_strided_slice %10 {offsets = [0, 64], sizes = [8, 8], strides = [1, 1]} : vector<8x96xbf16> to vector<8x8xbf16>
    "tpu.trace_start"() <{level = 10 : i32, message = "qe,ke->qk"}> : () -> ()
    %cst_8 = arith.constant dense<0.000000e+00> : vector<8x8xf32>
    %14 = tpu.matmul %11, %12, %cst_8 {dimension_numbers = #tpu.dot_dimension_numbers<[1], [1], [0], [0], [0, 0, 1, 0], [], []>} : vector<8x8xbf16>, vector<8x8xbf16>, vector<8x8xf32> -> vector<8x8xf32>
    "tpu.trace_stop"() : () -> ()
    %cst_9 = arith.constant 0.353553385 : f32
    %15 = vector.broadcast %cst_9 : f32 to vector<8x8xf32>
    %16 = arith.mulf %14, %15 : vector<8x8xf32>
    %cst_10 = arith.constant dense<0xFF800000> : vector<8xf32>
    %17 = vector.multi_reduction <maximumf>, %16, %cst_10 [1] : vector<8x8xf32> to vector<8xf32>
    %18 = vector.shape_cast %17 : vector<8xf32> to vector<8x1xf32>
    %19 = vector.broadcast %18 : vector<8x1xf32> to vector<8x8xf32>
    %20 = arith.subf %16, %19 : vector<8x8xf32>
    %21 = math.exp %20 : vector<8x8xf32>
    %cst_11 = arith.constant dense<0.000000e+00> : vector<8xf32>
    %22 = vector.multi_reduction <add>, %21, %cst_11 [1] : vector<8x8xf32> to vector<8xf32>
    %23 = vector.shape_cast %22 : vector<8xf32> to vector<8x1xf32>
    %24 = tpu.reciprocal %23 {approx = true} : vector<8x1xf32> -> vector<8x1xf32>
    %25 = vector.broadcast %24 : vector<8x1xf32> to vector<8x8xf32>
    %26 = arith.mulf %21, %25 : vector<8x8xf32>
    %27 = arith.truncf %26 : vector<8x8xf32> to vector<8x8xbf16>
    %cst_12 = arith.constant dense<0.000000e+00> : vector<8x8xf32>
    %28 = tpu.matmul %27, %13, %cst_12 {dimension_numbers = #tpu.dot_dimension_numbers<[1], [0], [0], [1], [0, 0, 1, 1], [], []>} : vector<8x8xbf16>, vector<8x8xbf16>, vector<8x8xf32> -> vector<8x8xf32>
    %29 = vector.extract_strided_slice %10 {offsets = [0, 8], sizes = [8, 8], strides = [1, 1]} : vector<8x96xbf16> to vector<8x8xbf16>
    %30 = vector.extract_strided_slice %10 {offsets = [0, 40], sizes = [8, 8], strides = [1, 1]} : vector<8x96xbf16> to vector<8x8xbf16>
    %31 = vector.extract_strided_slice %10 {offsets = [0, 72], sizes = [8, 8], strides = [1, 1]} : vector<8x96xbf16> to vector<8x8xbf16>
    "tpu.trace_start"() <{level = 10 : i32, message = "qe,ke->qk"}> : () -> ()
    %cst_13 = arith.constant dense<0.000000e+00> : vector<8x8xf32>
    %32 = tpu.matmul %29, %30, %cst_13 {dimension_numbers = #tpu.dot_dimension_numbers<[1], [1], [0], [0], [0, 0, 1, 0], [], []>} : vector<8x8xbf16>, vector<8x8xbf16>, vector<8x8xf32> -> vector<8x8xf32>
    "tpu.trace_stop"() : () -> ()
    %cst_14 = arith.constant 0.353553385 : f32
    %33 = vector.broadcast %cst_14 : f32 to vector<8x8xf32>
    %34 = arith.mulf %32, %33 : vector<8x8xf32>
    %cst_15 = arith.constant dense<0xFF800000> : vector<8xf32>
    %35 = vector.multi_reduction <maximumf>, %34, %cst_15 [1] : vector<8x8xf32> to vector<8xf32>
    %36 = vector.shape_cast %35 : vector<8xf32> to vector<8x1xf32>
    %37 = vector.broadcast %36 : vector<8x1xf32> to vector<8x8xf32>
    %38 = arith.subf %34, %37 : vector<8x8xf32>
    %39 = math.exp %38 : vector<8x8xf32>
    %cst_16 = arith.constant dense<0.000000e+00> : vector<8xf32>
    %40 = vector.multi_reduction <add>, %39, %cst_16 [1] : vector<8x8xf32> to vector<8xf32>
    %41 = vector.shape_cast %40 : vector<8xf32> to vector<8x1xf32>
    %42 = tpu.reciprocal %41 {approx = true} : vector<8x1xf32> -> vector<8x1xf32>
    %43 = vector.broadcast %42 : vector<8x1xf32> to vector<8x8xf32>
    %44 = arith.mulf %39, %43 : vector<8x8xf32>
    %45 = arith.truncf %44 : vector<8x8xf32> to vector<8x8xbf16>
    %cst_17 = arith.constant dense<0.000000e+00> : vector<8x8xf32>
    %46 = tpu.matmul %45, %31, %cst_17 {dimension_numbers = #tpu.dot_dimension_numbers<[1], [0], [0], [1], [0, 0, 1, 1], [], []>} : vector<8x8xbf16>, vector<8x8xbf16>, vector<8x8xf32> -> vector<8x8xf32>
    %47 = vector.extract_strided_slice %10 {offsets = [0, 16], sizes = [8, 8], strides = [1, 1]} : vector<8x96xbf16> to vector<8x8xbf16>
    %48 = vector.extract_strided_slice %10 {offsets = [0, 48], sizes = [8, 8], strides = [1, 1]} : vector<8x96xbf16> to vector<8x8xbf16>
    %49 = vector.extract_strided_slice %10 {offsets = [0, 80], sizes = [8, 8], strides = [1, 1]} : vector<8x96xbf16> to vector<8x8xbf16>
    "tpu.trace_start"() <{level = 10 : i32, message = "qe,ke->qk"}> : () -> ()
    %cst_18 = arith.constant dense<0.000000e+00> : vector<8x8xf32>
    %50 = tpu.matmul %47, %48, %cst_18 {dimension_numbers = #tpu.dot_dimension_numbers<[1], [1], [0], [0], [0, 0, 1, 0], [], []>} : vector<8x8xbf16>, vector<8x8xbf16>, vector<8x8xf32> -> vector<8x8xf32>
    "tpu.trace_stop"() : () -> ()
    %cst_19 = arith.constant 0.353553385 : f32
    %51 = vector.broadcast %cst_19 : f32 to vector<8x8xf32>
    %52 = arith.mulf %50, %51 : vector<8x8xf32>
    %cst_20 = arith.constant dense<0xFF800000> : vector<8xf32>
    %53 = vector.multi_reduction <maximumf>, %52, %cst_20 [1] : vector<8x8xf32> to vector<8xf32>
    %54 = vector.shape_cast %53 : vector<8xf32> to vector<8x1xf32>
    %55 = vector.broadcast %54 : vector<8x1xf32> to vector<8x8xf32>
    %56 = arith.subf %52, %55 : vector<8x8xf32>
    %57 = math.exp %56 : vector<8x8xf32>
    %cst_21 = arith.constant dense<0.000000e+00> : vector<8xf32>
    %58 = vector.multi_reduction <add>, %57, %cst_21 [1] : vector<8x8xf32> to vector<8xf32>
    %59 = vector.shape_cast %58 : vector<8xf32> to vector<8x1xf32>
    %60 = tpu.reciprocal %59 {approx = true} : vector<8x1xf32> -> vector<8x1xf32>
    %61 = vector.broadcast %60 : vector<8x1xf32> to vector<8x8xf32>
    %62 = arith.mulf %57, %61 : vector<8x8xf32>
    %63 = arith.truncf %62 : vector<8x8xf32> to vector<8x8xbf16>
    %cst_22 = arith.constant dense<0.000000e+00> : vector<8x8xf32>
    %64 = tpu.matmul %63, %49, %cst_22 {dimension_numbers = #tpu.dot_dimension_numbers<[1], [0], [0], [1], [0, 0, 1, 1], [], []>} : vector<8x8xbf16>, vector<8x8xbf16>, vector<8x8xf32> -> vector<8x8xf32>
    %65 = vector.extract_strided_slice %10 {offsets = [0, 24], sizes = [8, 8], strides = [1, 1]} : vector<8x96xbf16> to vector<8x8xbf16>
    %66 = vector.extract_strided_slice %10 {offsets = [0, 56], sizes = [8, 8], strides = [1, 1]} : vector<8x96xbf16> to vector<8x8xbf16>
    %67 = vector.extract_strided_slice %10 {offsets = [0, 88], sizes = [8, 8], strides = [1, 1]} : vector<8x96xbf16> to vector<8x8xbf16>
    "tpu.trace_start"() <{level = 10 : i32, message = "qe,ke->qk"}> : () -> ()
    %cst_23 = arith.constant dense<0.000000e+00> : vector<8x8xf32>
    %68 = tpu.matmul %65, %66, %cst_23 {dimension_numbers = #tpu.dot_dimension_numbers<[1], [1], [0], [0], [0, 0, 1, 0], [], []>} : vector<8x8xbf16>, vector<8x8xbf16>, vector<8x8xf32> -> vector<8x8xf32>
    "tpu.trace_stop"() : () -> ()
    %cst_24 = arith.constant 0.353553385 : f32
    %69 = vector.broadcast %cst_24 : f32 to vector<8x8xf32>
    %70 = arith.mulf %68, %69 : vector<8x8xf32>
    %cst_25 = arith.constant dense<0xFF800000> : vector<8xf32>
    %71 = vector.multi_reduction <maximumf>, %70, %cst_25 [1] : vector<8x8xf32> to vector<8xf32>
    %72 = vector.shape_cast %71 : vector<8xf32> to vector<8x1xf32>
    %73 = vector.broadcast %72 : vector<8x1xf32> to vector<8x8xf32>
    %74 = arith.subf %70, %73 : vector<8x8xf32>
    %75 = math.exp %74 : vector<8x8xf32>
    %cst_26 = arith.constant dense<0.000000e+00> : vector<8xf32>
    %76 = vector.multi_reduction <add>, %75, %cst_26 [1] : vector<8x8xf32> to vector<8xf32>
    %77 = vector.shape_cast %76 : vector<8xf32> to vector<8x1xf32>
    %78 = tpu.reciprocal %77 {approx = true} : vector<8x1xf32> -> vector<8x1xf32>
    %79 = vector.broadcast %78 : vector<8x1xf32> to vector<8x8xf32>
    %80 = arith.mulf %75, %79 : vector<8x8xf32>
    %81 = arith.truncf %80 : vector<8x8xf32> to vector<8x8xbf16>
    %cst_27 = arith.constant dense<0.000000e+00> : vector<8x8xf32>
    %82 = tpu.matmul %81, %67, %cst_27 {dimension_numbers = #tpu.dot_dimension_numbers<[1], [0], [0], [1], [0, 0, 1, 1], [], []>} : vector<8x8xbf16>, vector<8x8xbf16>, vector<8x8xf32> -> vector<8x8xf32>
    %83 = tpu.concatenate %28, %46, %64, %82 in 1 : vector<8x8xf32>, vector<8x8xf32>, vector<8x8xf32>, vector<8x8xf32> -> vector<8x32xf32>
    %84 = arith.truncf %83 : vector<8x32xf32> to vector<8x32xbf16>
    %c0_28 = arith.constant 0 : index
    %c0_29 = arith.constant 0 : index
    %85 = vector.load %arg5[%c0_28, %c0_29] : memref<32x32xbf16, #tpu.memory_space<vmem>>, vector<32x32xbf16>
    %cst_30 = arith.constant dense<0.000000e+00> : vector<8x32xf32>
    %86 = tpu.matmul %84, %85, %cst_30 {dimension_numbers = #tpu.dot_dimension_numbers<[1], [0], [0], [1], [0, 0, 1, 1], [], []>} : vector<8x32xbf16>, vector<32x32xbf16>, vector<8x32xf32> -> vector<8x32xf32>
    %c0_31 = arith.constant 0 : index
    %c0_32 = arith.constant 0 : index
    %87 = vector.load %arg6[%c0_31, %c0_32] : memref<1x32xf32, #tpu.memory_space<vmem>>, vector<1x32xf32>
    %88 = vector.broadcast %87 : vector<1x32xf32> to vector<8x32xf32>
    %89 = arith.addf %86, %88 : vector<8x32xf32>
    %90 = arith.addf %3, %89 : vector<8x32xf32>
    %cst_33 = arith.constant dense<0.000000e+00> : vector<8xf32>
    %91 = vector.multi_reduction <add>, %90, %cst_33 [1] : vector<8x32xf32> to vector<8xf32>
    %92 = vector.shape_cast %91 : vector<8xf32> to vector<8x1xf32>
    %cst_34 = arith.constant 3.200000e+01 : f32
    %93 = vector.broadcast %cst_34 : f32 to vector<8x1xf32>
    %94 = arith.divf %92, %93 : vector<8x1xf32>
    %95 = vector.broadcast %94 : vector<8x1xf32> to vector<8x32xf32>
    %96 = arith.subf %90, %95 : vector<8x32xf32>
    %97 = arith.mulf %96, %96 : vector<8x32xf32>
    %cst_35 = arith.constant dense<0.000000e+00> : vector<8xf32>
    %98 = vector.multi_reduction <add>, %97, %cst_35 [1] : vector<8x32xf32> to vector<8xf32>
    %99 = vector.shape_cast %98 : vector<8xf32> to vector<8x1xf32>
    %cst_36 = arith.constant 3.200000e+01 : f32
    %100 = vector.broadcast %cst_36 : f32 to vector<8x1xf32>
    %101 = arith.divf %99, %100 : vector<8x1xf32>
    %102 = vector.broadcast %94 : vector<8x1xf32> to vector<8x32xf32>
    %103 = arith.subf %90, %102 : vector<8x32xf32>
    %cst_37 = arith.constant 9.99999974E-6 : f32
    %104 = vector.broadcast %cst_37 : f32 to vector<8x1xf32>
    %105 = arith.addf %101, %104 : vector<8x1xf32>
    %106 = math.rsqrt %105 : vector<8x1xf32>
    %107 = vector.broadcast %106 : vector<8x1xf32> to vector<8x32xf32>
    %108 = arith.mulf %103, %107 : vector<8x32xf32>
    %c0_38 = arith.constant 0 : index
    %c0_39 = arith.constant 0 : index
    %109 = vector.load %arg7[%c0_38, %c0_39] : memref<1x32xf32, #tpu.memory_space<vmem>>, vector<1x32xf32>
    %110 = vector.broadcast %109 : vector<1x32xf32> to vector<8x32xf32>
    %111 = arith.mulf %108, %110 : vector<8x32xf32>
    %c0_40 = arith.constant 0 : index
    %c0_41 = arith.constant 0 : index
    %112 = vector.load %arg8[%c0_40, %c0_41] : memref<1x32xf32, #tpu.memory_space<vmem>>, vector<1x32xf32>
    %113 = vector.broadcast %112 : vector<1x32xf32> to vector<8x32xf32>
    %114 = arith.addf %111, %113 : vector<8x32xf32>
    %115 = arith.truncf %114 : vector<8x32xf32> to vector<8x32xbf16>
    %c0_42 = arith.constant 0 : index
    %c0_43 = arith.constant 0 : index
    %116 = vector.load %arg9[%c0_42, %c0_43] : memref<32x2048xbf16, #tpu.memory_space<vmem>>, vector<32x2048xbf16>
    %cst_44 = arith.constant dense<0.000000e+00> : vector<8x2048xf32>
    %117 = tpu.matmul %115, %116, %cst_44 {dimension_numbers = #tpu.dot_dimension_numbers<[1], [0], [0], [1], [0, 0, 1, 1], [], []>} : vector<8x32xbf16>, vector<32x2048xbf16>, vector<8x2048xf32> -> vector<8x2048xf32>
    %c0_45 = arith.constant 0 : index
    %c0_46 = arith.constant 0 : index
    %118 = vector.load %arg10[%c0_45, %c0_46] : memref<1x2048xf32, #tpu.memory_space<vmem>>, vector<1x2048xf32>
    %119 = vector.broadcast %118 : vector<1x2048xf32> to vector<8x2048xf32>
    %120 = arith.addf %117, %119 : vector<8x2048xf32>
    %cst_47 = arith.constant 0.000000e+00 : f32
    %121 = vector.broadcast %cst_47 : f32 to vector<8x2048xf32>
    %122 = arith.maximumf %120, %121 : vector<8x2048xf32>
    %123 = arith.truncf %122 : vector<8x2048xf32> to vector<8x2048xbf16>
    %c0_48 = arith.constant 0 : index
    %c0_49 = arith.constant 0 : index
    %124 = vector.load %arg11[%c0_48, %c0_49] : memref<2048x32xbf16, #tpu.memory_space<vmem>>, vector<2048x32xbf16>
    %cst_50 = arith.constant dense<0.000000e+00> : vector<8x32xf32>
    %125 = tpu.matmul %123, %124, %cst_50 {dimension_numbers = #tpu.dot_dimension_numbers<[1], [0], [0], [1], [0, 0, 1, 1], [], []>} : vector<8x2048xbf16>, vector<2048x32xbf16>, vector<8x32xf32> -> vector<8x32xf32>
    %c0_51 = arith.constant 0 : index
    %c0_52 = arith.constant 0 : index
    %126 = vector.load %arg12[%c0_51, %c0_52] : memref<1x32xf32, #tpu.memory_space<vmem>>, vector<1x32xf32>
    %127 = vector.broadcast %126 : vector<1x32xf32> to vector<8x32xf32>
    %128 = arith.addf %125, %127 : vector<8x32xf32>
    %129 = arith.addf %114, %128 : vector<8x32xf32>
    %cst_53 = arith.constant dense<0.000000e+00> : vector<8xf32>
    %130 = vector.multi_reduction <add>, %129, %cst_53 [1] : vector<8x32xf32> to vector<8xf32>
    %131 = vector.shape_cast %130 : vector<8xf32> to vector<8x1xf32>
    %cst_54 = arith.constant 3.200000e+01 : f32
    %132 = vector.broadcast %cst_54 : f32 to vector<8x1xf32>
    %133 = arith.divf %131, %132 : vector<8x1xf32>
    %134 = vector.broadcast %133 : vector<8x1xf32> to vector<8x32xf32>
    %135 = arith.subf %129, %134 : vector<8x32xf32>
    %136 = arith.mulf %135, %135 : vector<8x32xf32>
    %cst_55 = arith.constant dense<0.000000e+00> : vector<8xf32>
    %137 = vector.multi_reduction <add>, %136, %cst_55 [1] : vector<8x32xf32> to vector<8xf32>
    %138 = vector.shape_cast %137 : vector<8xf32> to vector<8x1xf32>
    %cst_56 = arith.constant 3.200000e+01 : f32
    %139 = vector.broadcast %cst_56 : f32 to vector<8x1xf32>
    %140 = arith.divf %138, %139 : vector<8x1xf32>
    %141 = vector.broadcast %133 : vector<8x1xf32> to vector<8x32xf32>
    %142 = arith.subf %129, %141 : vector<8x32xf32>
    %cst_57 = arith.constant 9.99999974E-6 : f32
    %143 = vector.broadcast %cst_57 : f32 to vector<8x1xf32>
    %144 = arith.addf %140, %143 : vector<8x1xf32>
    %145 = math.rsqrt %144 : vector<8x1xf32>
    %146 = vector.broadcast %145 : vector<8x1xf32> to vector<8x32xf32>
    %147 = arith.mulf %142, %146 : vector<8x32xf32>
    %c0_58 = arith.constant 0 : index
    %c0_59 = arith.constant 0 : index
    %148 = vector.load %arg13[%c0_58, %c0_59] : memref<1x32xf32, #tpu.memory_space<vmem>>, vector<1x32xf32>
    %149 = vector.broadcast %148 : vector<1x32xf32> to vector<8x32xf32>
    %150 = arith.mulf %147, %149 : vector<8x32xf32>
    %c0_60 = arith.constant 0 : index
    %c0_61 = arith.constant 0 : index
    %151 = vector.load %arg14[%c0_60, %c0_61] : memref<1x32xf32, #tpu.memory_space<vmem>>, vector<1x32xf32>
    %152 = vector.broadcast %151 : vector<1x32xf32> to vector<8x32xf32>
    %153 = arith.addf %150, %152 : vector<8x32xf32>
    %c0_62 = arith.constant 0 : index
    %c0_63 = arith.constant 0 : index
    %c0_64 = arith.constant 0 : index
    %154 = vector.load %arg15[%c0_62, %c0_63, %c0_64] : memref<1x8x32xf32, #tpu.memory_space<vmem>>, vector<1x8x32xf32>
    %155 = vector.shape_cast %154 : vector<1x8x32xf32> to vector<8x32xf32>
    %156 = vector.shape_cast %153 : vector<8x32xf32> to vector<1x8x32xf32>
    tpu.vector_store %arg15[%c0_62, %c0_63, %c0_64], %156 {strides = array<i32>} : memref<1x8x32xf32, #tpu.memory_space<vmem>>, vector<1x8x32xf32>,
    return
  }
  func.func @transform_0(%arg0: i32) -> (i32, i32, i32) {
    %c0_i32 = arith.constant 0 : i32
    %c0_i32_0 = arith.constant 0 : i32
    %c0_i32_1 = arith.constant 0 : i32
    return %arg0, %c0_i32, %c0_i32_0 : i32, i32, i32
  }
  func.func @transform_1(%arg0: i32) -> (i32, i32) {
    %c0_i32 = arith.constant 0 : i32
    %c0_i32_0 = arith.constant 0 : i32
    %c0_i32_1 = arith.constant 0 : i32
    return %c0_i32, %c0_i32_0 : i32, i32
  }
  func.func @transform_2(%arg0: i32) -> (i32, i32) {
    %c0_i32 = arith.constant 0 : i32
    %c0_i32_0 = arith.constant 0 : i32
    %c0_i32_1 = arith.constant 0 : i32
    return %c0_i32, %c0_i32_0 : i32, i32
  }
  func.func @transform_3(%arg0: i32) -> (i32, i32) {
    %c0_i32 = arith.constant 0 : i32
    %c0_i32_0 = arith.constant 0 : i32
    %c0_i32_1 = arith.constant 0 : i32
    return %c0_i32, %c0_i32_0 : i32, i32
  }
  func.func @transform_4(%arg0: i32) -> (i32, i32) {
    %c0_i32 = arith.constant 0 : i32
    %c0_i32_0 = arith.constant 0 : i32
    %c0_i32_1 = arith.constant 0 : i32
    return %c0_i32, %c0_i32_0 : i32, i32
  }
  func.func @transform_5(%arg0: i32) -> (i32, i32) {
    %c0_i32 = arith.constant 0 : i32
    %c0_i32_0 = arith.constant 0 : i32
    %c0_i32_1 = arith.constant 0 : i32
    return %c0_i32, %c0_i32_0 : i32, i32
  }
  func.func @transform_6(%arg0: i32) -> (i32, i32) {
    %c0_i32 = arith.constant 0 : i32
    %c0_i32_0 = arith.constant 0 : i32
    %c0_i32_1 = arith.constant 0 : i32
    return %c0_i32, %c0_i32_0 : i32, i32
  }
  func.func @transform_7(%arg0: i32) -> (i32, i32) {
    %c0_i32 = arith.constant 0 : i32
    %c0_i32_0 = arith.constant 0 : i32
    %c0_i32_1 = arith.constant 0 : i32
    return %c0_i32, %c0_i32_0 : i32, i32
  }
  func.func @transform_8(%arg0: i32) -> (i32, i32) {
    %c0_i32 = arith.constant 0 : i32
    %c0_i32_0 = arith.constant 0 : i32
    %c0_i32_1 = arith.constant 0 : i32
    return %c0_i32, %c0_i32_0 : i32, i32
  }
  func.func @transform_9(%arg0: i32) -> (i32, i32) {
    %c0_i32 = arith.constant 0 : i32
    %c0_i32_0 = arith.constant 0 : i32
    %c0_i32_1 = arith.constant 0 : i32
    return %c0_i32, %c0_i32_0 : i32, i32
  }
  func.func @transform_10(%arg0: i32) -> (i32, i32) {
    %c0_i32 = arith.constant 0 : i32
    %c0_i32_0 = arith.constant 0 : i32
    %c0_i32_1 = arith.constant 0 : i32
    return %c0_i32, %c0_i32_0 : i32, i32
  }
  func.func @transform_11(%arg0: i32) -> (i32, i32) {
    %c0_i32 = arith.constant 0 : i32
    %c0_i32_0 = arith.constant 0 : i32
    %c0_i32_1 = arith.constant 0 : i32
    return %c0_i32, %c0_i32_0 : i32, i32
  }
  func.func @transform_12(%arg0: i32) -> (i32, i32) {
    %c0_i32 = arith.constant 0 : i32
    %c0_i32_0 = arith.constant 0 : i32
    %c0_i32_1 = arith.constant 0 : i32
    return %c0_i32, %c0_i32_0 : i32, i32
  }
  func.func @transform_13(%arg0: i32) -> (i32, i32) {
    %c0_i32 = arith.constant 0 : i32
    %c0_i32_0 = arith.constant 0 : i32
    %c0_i32_1 = arith.constant 0 : i32
    return %c0_i32, %c0_i32_0 : i32, i32
  }
  func.func @transform_14(%arg0: i32) -> (i32, i32, i32) {
    %c0_i32 = arith.constant 0 : i32
    %c0_i32_0 = arith.constant 0 : i32
    %c0_i32_1 = arith.constant 0 : i32
    return %arg0, %c0_i32, %c0_i32_0 : i32, i32, i32
  }
}

</mosaic_0001>

<bundles_post_ra>
// kernel: tpu_custom_call.1
= control target key start
LH: loop header
LB: loop body
LE: loop exit
PB: predicated region body
PF: predicated region fallthrough
CT: control target
= control target key end

     0   :  { %s4564_s0 = inlined_call_operand.vmem [shape: f32[2,8,32], index: 0, kind: input, shape index: {}]   ;;  %s4565_s1 = inlined_call_operand.vmem [shape: f32[8,32], index: 1, kind: input, shape index: {}]   ;;  %s4566_s2 = inlined_call_operand.vmem [shape: bf16[32,96], index: 2, kind: input, shape index: {}]   ;;  %s4567_s3 = inlined_call_operand.vmem [shape: f32[1,96], index: 3, kind: input, shape index: {}]   ;;  %s4568_s4 = inlined_call_operand.vmem [shape: bf16[32,32], index: 4, kind: input, shape index: {}]   ;;  %s4569_s5 = inlined_call_operand.vmem [shape: f32[1,32], index: 5, kind: input, shape index: {}]   ;;  %s4570_s6 = inlined_call_operand.vmem [shape: f32[1,32], index: 6, kind: input, shape index: {}]   ;;  %s4571_s7 = inlined_call_operand.vmem [shape: f32[1,32], index: 7, kind: input, shape index: {}]   ;;  %s4572_s8 = inlined_call_operand.vmem [shape: bf16[32,2048], index: 8, kind: input, shape index: {}]   ;;  %s4573_s9 = inlined_call_operand.vmem [shape: f32[1,2048], index: 9, kind: input, shape index: {}]   ;;  %s4574_s10 = inlined_call_operand.vmem [shape: bf16[2048,32], index: 10, kind: input, shape index: {}]   ;;  %s4575_s11 = inlined_call_operand.vmem [shape: f32[1,32], index: 11, kind: input, shape index: {}]   ;;  %s4576_s12 = inlined_call_operand.vmem [shape: f32[1,32], index: 12, kind: input, shape index: {}]   ;;  %s4577_s13 = inlined_call_operand.vmem [shape: f32[1,32], index: 13, kind: input, shape index: {}]   ;;  %s4578_s14 = inlined_call_operand.hbm [shape: f32[2,8,32], index: 14, kind: output, shape index: {}]  }
   0x1   :  { %4583 = sst [smem:[#allocation9_spill]] %s4564_s0 }
   0x2   :  { %19 = vsyncpa [#allocation3], 0 }
   0x3   :  { %21 = vsyncpa [#allocation3 + $0x1], 0  ;;  %s3741_s29 = smov 0   ;;  %s3743_s30 = smov 0  }
   0x4   :  { %s3745_s15 = smov 0   ;;  %s3747_s16 = smov 0  }
   0x5 LB: > { %4584 = sst [smem:[#allocation5_spill]] %s3645_s15  ;;  %s3762_s17 = sadd.s32 4294967295, %s3649_s16   ;;  %s3649_s16 = sphi %s3747_s16, %s4592_s16   ;;  %s3645_s15 = sphi %s3745_s15, %s4594_s15   ;;  %s3641_s30 = sphi %s3743_s30, %s4596_s30   ;;  %s3637_s29 = sphi %s3741_s29, %s4595_s29  }
   0x6   : > { %s2648_s18 = sadd.s32 4294967294, %s3649_s16   ;;  %s3766_s19 = sadd.s32 1, %s3649_s16  }
   0x7   : > { %4585 = sst [smem:[#allocation6_spill]] %s3766_s19  ;;  %s333_s20 = sadd.s32 1, %s3645_s15 }
   0x8   : > { %s330_s21 = ssub.s32 %s3649_s16, %s3766_s19  ;;  %p343_p0 = scmp.ne.s32.totalorder %s3645_s15, %s3641_s30 }
   0x9   : > { %p331_p1 = scmp.eq.s32.totalorder %s330_s21, 0  ;;  %p344_p2 = scmp.eq.s32.totalorder %s3762_s17, 1 }
   0xa   : > { %p349_p3 = scmp.ne.s32.totalorder %s3641_s30, %s3637_s29  ;;  %p350_p4 = scmp.eq.s32.totalorder %s2648_s18, 1 }
   0xb   : > { %s3777_s22 = scalar_select %p331_p1, %s3645_s15, %s333_s20  }
   0xc   : > { %p3779_p5 = por %p344_p2, %p343_p0  ;;  %p3783_p6 = por %p350_p4, %p349_p3 }
   0xd   : > { %4586 = sst [smem:[#allocation7_spill]] %s3777_s22  ;;  %p2651_p7 = scmp.ge.s32.totalorder %s3649_s16, 1 }
   0xe   : > { %s4588_s24 = scalar_select %p3783_p6, 1, 0 }
   0xf   : > { %p414_p8 = scmp.lt.s32.totalorder %s3649_s16, 3 }
  0x10   : > { %4589 = sst [smem:[#allocation8_spill]] %s4588_s24 }
  0x11   : > { %p415_p9 = pnand %p2651_p7, %p414_p8 }
  0x12   : > { %p459_p10 = scmp.lt.s32.totalorder (!%p415_p9), %s3762_s17, 1  ;;  %s4590_s0 = sld [smem:[#allocation9_spill]] (!%p415_p9) }
  0x13   : > { %418 = sbr.rel (%p415_p9) target bundleno = 1984 (0x7c0), region = 76  ;;  %s3651_s15 = smov (!%p415_p9), 104  }
  0x14   : > { %s3652_s19 = smov (!%p415_p9), 120   ;;  %s3653_s22 = smov (!%p415_p9), 96  }
  0x15   : > { %s3655_s27 = smov (!%p415_p9), 72   ;;  %s3656_s28 = smov (!%p415_p9), 88  }
  0x16   : > { %s3659_s21 = smov (!%p415_p9), 40   ;;  %s3660_s25 = smov (!%p415_p9), 56  }
  0x17   : > { %s3661_s26 = smov (!%p415_p9), 48  }
  0x18   : > { %v3341_v0 = vld [vmem:[%s4566_s2 + $0x8] sm:$0xff]  ;;  %v3340_v1 = vld [vmem:[%s4566_s2] sm:$0xff]  ;;  %s460_s18 = scalar_select %p459_p10, %s3762_s17, 1  ;;  %vm488_vm0 = vcmask 261120   ;;  %vm511_vm1 = vcmask 64512   ;;  %vm549_vm2 = vcmask 1043456  }
  0x19   : > { %498 = vmatpush.bf16.msra.mxu0 %v3341_v0  ;;  %v465_v2 = vld [vmem:[%s4565_s1] sm:$0xff]  ;;  %vm750_vm3 = vcmask 130048   ;;  %vm752_vm4 = vcmask 195584  }
  0x1a   : > { %s2653_s20 = sshll.u32 %s460_s18, 3  ;;  %v3558_v6 = vld [vmem:[%s4567_s3] ss:$0 sm:$0xff]  ;;  %s3657_s18 = smov 112  }
  0x1b   : > { %s462_s24 = scalar_lea.vmem %s4590_s0, %s2653_s20  ;;  %s3658_s20 = smov 64  }
  0x1c   : > { %v464_v3 = vld [vmem:[%s462_s24] sm:$0xff]  ;;  %s3654_s24 = smov 80   ;;  %s3337_s0 = sshll.u32 %s3762_s17, 3 }
  0x1d   : > { %499 = vmatpush.bf16.msra.mxu0 %v3340_v1  ;;  %v3803_v4 = vadd.f32 %v465_v2, %v464_v3 }
  0x1f   : > { %v467_v5 = vpack.c.bf16 %v3803_v4, %v3803_v4 }
  0x21   : > { %2662 = vmatmul.msk.bf16.vlgmr.msra.gmra.mxu0 %vm488_vm0, %v467_v5 }
  0x9e   : > { %v501_v7 = vpop.f32.mrf.mxu0 }
  0x9f   : > { %v502_v8 = vadd.f32 %v3558_v6, %v501_v7 }
  0xa1   : > { %v505_v9 = vpack.c.bf16 %v502_v8, %v502_v8 }
  0xa3   : > { %v507_v10 = vunpack.c.l.b16 %v505_v9 }
  0xa5   : > { %v3811_v11 = vpack.c.b16 %v507_v10, %v507_v10 }
  0xa6   : > { %v503_v12 = vpop.f32.mrf.mxu0 }
  0xa7   : > { %680 = vrot.lane.b32.xlu2 %v3811_v11, %s3651_s15  ;;  %566 = vrot.lane.b32.xlu1 %v3811_v11, %s3652_s19  ;;  %s3662_s15 = smov 8   ;;  %s3663_s19 = smov 16  }
  0xa8   : > { %509 = vrot.lane.b32.xlu0 %v3811_v11, %s3653_s22  ;;  %s3664_s22 = smov 24  }
  0xaf   : > { %625 = vrot.lane.b32.xlu2 %v3811_v11, %s3654_s24  ;;  %682 = vrot.lane.b32.xlu1 %v3811_v11, %s3655_s27 }
  0xb0   : > { %568 = vrot.lane.b32.xlu0 %v3811_v11, %s3656_s28  ;;  %s456_s28 = sand.u32 1, %s3641_s30  }
  0xb8   : > { %623 = vrot.lane.b32.xlu0 %v3811_v11, %s3657_s18  ;;  %s2652_s18 = sshll.u32 %s456_s28, 3 }
  0xb9   : > { %s458_s24 = scalar_lea.vmem [#allocation2], %s2652_s18  ;;  %s3607_s18 = scalar_lea.hbm %s4578_s14, 16 }
  0xba   : > { %s2586_s17 = sshll.u32 %s458_s24, 4  ;;  %s2587_s17 = int_to_ptr.vmem [resolvable:$true] %s2586_s17 }
 0x101   : > { %v681_v13 = vpop.permute.xlu2 %680 }
 0x109   : > { %v626_v14 = vpop.permute.xlu2 %625 }
 0x10a   : > { %v631_v15 = vsel %vm511_vm1, %v626_v14, 0 }
 0x10b   : > { %640 = vmatpush.bf16.xpose.msrb.mxu0 %v631_v15 }
 0x119   : > { %v567_v16 = vpop.permute.xlu1 %566 }
 0x11a   : > { %v510_v17 = vpop.permute.xlu0 %509 }
 0x11b   : > { %v516_v18 = vsel %vm511_vm1, %v510_v17, 0 }
 0x11c   : > { %525 = vmatpush.bf16.xpose.msra.mxu1 %v516_v18 }
 0x121   : > { %v683_v19 = vpop.permute.xlu1 %682 }
 0x122   : > { %v569_v20 = vpop.permute.xlu0 %568  ;;  %v688_v21 = vsel %vm511_vm1, %v683_v19, 0 }
 0x123   : > { %2663 = vmatmul.msk.bf16.vlgmr.msra.gmra.mxu1 %vm511_vm1, %v505_v9  ;;  %v574_v22 = vsel %vm511_vm1, %v569_v20, 0 }
 0x124   : > { %583 = vmatpush.bf16.xpose.msra.mxu3 %v574_v22 }
 0x12a   : > { %v624_v23 = vpop.permute.xlu0 %623 }
 0x12b   : > { %2665 = vmatmul.msk.bf16.vlgmr.msra.gmra.mxu3 %vm511_vm1, %v567_v16  ;;  %2667 = vmatmul.msk.bf16.vlgmr.msrb.gmra.mxu0 %vm511_vm1, %v624_v23 }
 0x12c   : > { %697 = vmatpush.bf16.xpose.msrb.mxu3 %v688_v21 }
 0x13b   : > { %2669 = vmatmul.msk.bf16.vlgmr.msrb.gmra.mxu3 %vm511_vm1, %v681_v13 }
 0x1a0   : > { %v527_v24 = vpop.f32.mrf.mxu1 }
 0x1a1   : > { %v531_v25 = vmul.f32 0.35355338, %v527_v24 }
 0x1a3   : > { %v532_v26 = vsel %vm511_vm1, %v531_v25, -inf }
 0x1a4   : > { %533 = vmax.xlane.f32.xlu1 %v532_v26 }
 0x1a8   : > { %v529_v27 = vpop.f32.mrf.mxu1  ;;  %v642_v28 = vpop.f32.mrf.mxu0 }
 0x1a9   : > { %v646_v33 = vmul.f32 0.35355338, %v642_v28 }
 0x1ab   : > { %v647_v35 = vsel %vm511_vm1, %v646_v33, -inf }
 0x1ae   : > { %v585_v29 = vpop.f32.mrf.mxu3 }
 0x1af   : > { %v589_v30 = vmul.f32 0.35355338, %v585_v29  ;;  %v3343_v29 = vld [vmem:[%s4568_s4 + $0x8] sm:$0xff] }
 0x1b0   : > { %v644_v31 = vpop.f32.mrf.mxu0  ;;  %784 = vmatpush.bf16.msra.mxu0 %v3343_v29  ;;  %v2698_v29 = vld [vmem:[%s4572_s8 + $0x10] sm:$0xf] }
 0x1b1   : > { %v590_v32 = vsel %vm511_vm1, %v589_v30, -inf }
 0x1b2   : > { %591 = vmax.xlane.f32.xlu2 %v590_v32 }
 0x1b6   : > { %v587_v34 = vpop.f32.mrf.mxu3 }
 0x1ba   : > { %648 = vmax.xlane.f32.xlu2 %v647_v35 }
 0x1be   : > { %v699_v36 = vpop.f32.mrf.mxu3 }
 0x1bf   : > { %v703_v37 = vmul.f32 0.35355338, %v699_v36 }
 0x1c1   : > { %v704_v38 = vsel %vm511_vm1, %v703_v37, -inf }
 0x1c2   : > { %705 = vmax.xlane.f32.xlu0 %v704_v38  ;;  %v3559_v38 = vld [vmem:[%s4569_s5] ss:$0 sm:$0xff] }
 0x1c6   : > { %v701_v39 = vpop.f32.mrf.mxu3 }
 0x1d2   : > { %544 = vrot.lane.b32.xlu2 %v3811_v11, %s3658_s20  ;;  %s2574_s20 = scalar_lea.sflag [#allocation3], %s456_s28 }
 0x1da   : > { %716 = vrot.lane.b32.xlu2 %v3811_v11, %s3659_s21 }
 0x217   : > { %v534_v40 = vpop.xlane.xlu1 %533 }
 0x218   : > { %v535_v41 = vsub.f32 %v531_v25, %v534_v40 }
 0x21a   : > { %v536_v42 = vmul.f32 1.442695, %v535_v41 }
 0x21c   : > { %3565 = vpow2.f32 %v536_v42 }
 0x222   : > { %v3566_v43 = vpop.eup %3565 }
 0x223   : > { %v538_v44 = vsel %vm511_vm1, %v3566_v43, 0.0 }
 0x224   : > { %539 = vadd.xlane.f32.xlu1 %v538_v44  ;;  %v3665_v44 = vmov 32.0  }
 0x225   : > { %v592_v45 = vpop.xlane.xlu2 %591 }
 0x226   : > { %v593_v48 = vsub.f32 %v589_v30, %v592_v45  ;;  %v3342_v30 = vld [vmem:[%s4568_s4] sm:$0xff] }
 0x227   : > { %785 = vmatpush.bf16.msra.mxu0 %v3342_v30 }
 0x228   : > { %v594_v50 = vmul.f32 1.442695, %v593_v48 }
 0x22d   : > { %v649_v46 = vpop.xlane.xlu2 %648 }
 0x22e   : > { %v650_v47 = vsub.f32 %v646_v33, %v649_v46 }
 0x230   : > { %v651_v49 = vmul.f32 1.442695, %v650_v47 }
 0x232   : > { %3567 = vpow2.f32 %v651_v49 }
 0x233   : > { %3569 = vpow2.f32 %v594_v50 }
 0x235   : > { %v545_v51 = vpop.permute.xlu2 %544  ;;  %v706_v52 = vpop.xlane.xlu0 %705 }
 0x236   : > { %v551_v53 = vsel %vm549_vm2, %v545_v51, 0  ;;  %v707_v55 = vsub.f32 %v703_v37, %v706_v52 }
 0x237   : > { %560 = vmatpush.bf16.msra.mxu2 %v551_v53 }
 0x238   : > { %v3568_v54 = vpop.eup %3567  ;;  %v708_v57 = vmul.f32 1.442695, %v707_v55  ;;  %v2746_v55 = vld [vmem:[%s4572_s8 + $0x80] sm:$0xf] }
 0x239   : > { %v653_v56 = vsel %vm511_vm1, %v3568_v54, 0.0  ;;  %v3570_v58 = vpop.eup %3569 }
 0x23a   : > { %654 = vadd.xlane.f32.xlu0 %v653_v56  ;;  %3571 = vpow2.f32 %v708_v57  ;;  %v596_v59 = vsel %vm511_vm1, %v3570_v58, 0.0  ;;  %v3368_v56 = vld [vmem:[%s4572_s8 + $0xbc] sm:$0xf0]  ;;  %v3360_v57 = vld [vmem:[%s4572_s8 + $0x84] sm:$0xf] }
 0x23d   : > { %602 = vrot.lane.b32.xlu1 %v3811_v11, %s3660_s25  ;;  %v717_v3 = vpop.permute.xlu2 %716 }
 0x23e   : > { %v722_v7 = vsel %vm549_vm2, %v717_v3, 0  ;;  %v2682_v3 = vld [vmem:[%s4572_s8] sm:$0xf] }
 0x240   : > { %v3572_v60 = vpop.eup %3571 }
 0x241   : > { %v710_v61 = vsel %vm511_vm1, %v3572_v60, 0.0 }
 0x242   : > { %597 = vadd.xlane.f32.xlu0 %v596_v59  ;;  %v2748_v59 = vld [vmem:[%s4572_s8 + $0xc0] sm:$0xf0] }
 0x24a   : > { %711 = vadd.xlane.f32.xlu0 %v710_v61  ;;  %v3369_v61 = vld [vmem:[%s4572_s8 + $0xc4] sm:$0xf0] }
 0x25e   : > { %659 = vrot.lane.b32.xlu0 %v3811_v11, %s3661_s26 }
 0x297   : > { %v540_v62 = vpop.xlane.xlu1 %539 }
 0x298   : > { %3573 = vrcp.f32 %v540_v62  ;;  %v2751_v62 = vor.u32 %v3360_v57, %v2748_v59  ;;  %v3364_v57 = vld [vmem:[%s4572_s8 + $0xa4] sm:$0xf] }
 0x29a   : > { %1082 = vmatpush.bf16.msra.mxu3 %v2751_v62  ;;  %v2788_v62 = vld [vmem:[%s4572_s8 + $0xe8] sm:$0xf0] }
 0x29e   : > { %v3574_v63 = vpop.eup %3573 }
 0x29f   : > { %v542_v0 = vmul.f32 %v3574_v63, %v3566_v43 }
 0x2a1   : > { %v543_v1 = vpack.c.bf16 %v542_v0, %v542_v0  ;;  %v3361_v0 = vld [vmem:[%s4572_s8 + $0x8c] sm:$0xf] }
 0x2a3   : > { %2664 = vmatmul.msk.bf16.vlgmr.msra.gmra.mxu2 %vm511_vm1, %v543_v1  ;;  %v2756_v1 = vld [vmem:[%s4572_s8 + $0xc8] sm:$0xf0] }
 0x2ad   : > { %v655_v2 = vpop.xlane.xlu0 %654 }
 0x2af   : > { %v603_v5 = vpop.permute.xlu1 %602 }
 0x2b0   : > { %v608_v6 = vsel %vm549_vm2, %v603_v5, 0  ;;  %v3352_v5 = vld [vmem:[%s4572_s8 + $0x3c] sm:$0xf0] }
 0x2b1   : > { %617 = vmatpush.bf16.msrb.mxu2 %v608_v6  ;;  %v3344_v6 = vld [vmem:[%s4572_s8 + $0x4] sm:$0xf] }
 0x2b5   : > { %731 = vmatpush.bf16.msra.mxu2 %v722_v7  ;;  %v598_v8 = vpop.xlane.xlu0 %597  ;;  %v2683_v7 = vor.u32 %v3352_v5, %v2682_v3  ;;  %v3356_v3 = vld [vmem:[%s4572_s8 + $0x5c] sm:$0xf0] }
 0x2b6   : > { %3575 = vrcp.f32 %v598_v8  ;;  %v2684_v8 = vld [vmem:[%s4572_s8 + $0x40] sm:$0xf0] }
 0x2bc   : > { %v3576_v9 = vpop.eup %3575 }
 0x2bd   : > { %v600_v10 = vmul.f32 %v3576_v9, %v3570_v58  ;;  %v712_v11 = vpop.xlane.xlu0 %711  ;;  %v2747_v58 = vor.u32 %v3368_v56, %v2746_v55  ;;  %v2690_v9 = vld [vmem:[%s4572_s8 + $0x8] sm:$0xf]  ;;  %v2778_v55 = vld [vmem:[%s4572_s8 + $0xa0] sm:$0xf] }
 0x2be   : > { %3577 = vrcp.f32 %v712_v11  ;;  %v2687_v11 = vor.u32 %v3344_v6, %v2684_v8  ;;  %v3372_v56 = vld [vmem:[%s4572_s8 + $0xdc] sm:$0xf0]  ;;  %v2716_v8 = vld [vmem:[%s4572_s8 + $0x60] sm:$0xf0] }
 0x2bf   : > { %v601_v12 = vpack.c.bf16 %v600_v10, %v600_v10  ;;  %3579 = vrcp.f32 %v655_v2  ;;  %v2759_v2 = vor.u32 %v3361_v0, %v2756_v1  ;;  %v3353_v10 = vld [vmem:[%s4572_s8 + $0x44] sm:$0xf0]  ;;  %v2779_v0 = vor.u32 %v3372_v56, %v2778_v55  ;;  %v3404_v55 = vld [vmem:[%s4574_s10 + $0xe0] sm:$0xff] }
 0x2c0   : > { %3581 = vrcp.f32 %v3665_v44  ;;  %1083 = vmatpush.bf16.msra.mxu3 %v2687_v11  ;;  %v3349_v11 = vld [vmem:[%s4572_s8 + $0x2c] sm:$0xf]  ;;  %v3388_v56 = vld [vmem:[%s4574_s10 + $0x60] sm:$0xff] }
 0x2c1   : > { %2666 = vmatmul.msk.bf16.vlgmr.msrb.gmra.mxu2 %vm511_vm1, %v601_v12  ;;  %1108 = vmatpush.bf16.msrb.mxu0 %v2759_v2  ;;  %v2691_v12 = vor.u32 %v3353_v10, %v2690_v9  ;;  %v2714_v2 = vld [vmem:[%s4572_s8 + $0x20] sm:$0xf]  ;;  %v2722_v9 = vld [vmem:[%s4572_s8 + $0x28] sm:$0xf] }
 0x2c2   : > { %v3357_v10 = vld [vmem:[%s4572_s8 + $0x64] sm:$0xf0] }
 0x2c4   : > { %v3578_v13 = vpop.eup %3577 }
 0x2c5   : > { %v714_v14 = vmul.f32 %v3578_v13, %v3572_v60  ;;  %v3580_v15 = vpop.eup %3579  ;;  %v2754_v60 = vld [vmem:[%s4572_s8 + $0x88] sm:$0xf]  ;;  %v3345_v13 = vld [vmem:[%s4572_s8 + $0xc] sm:$0xf] }
 0x2c6   : > { %v657_v16 = vmul.f32 %v3580_v15, %v3568_v54  ;;  %v3582_v45 = vpop.eup %3581  ;;  %v2755_v63 = vor.u32 %v3369_v61, %v2754_v60  ;;  %v3373_v60 = vld [vmem:[%s4572_s8 + $0xe4] sm:$0xf0]  ;;  %v3365_v61 = vld [vmem:[%s4572_s8 + $0xac] sm:$0xf] }
 0x2c7   : > { %v715_v17 = vpack.c.bf16 %v714_v14, %v714_v14  ;;  %v796_v46 = vmul.f32 32.0, %v3582_v45  ;;  %vm800_vm5 = vweird.f32 %v3582_v45  ;;  %v2692_v14 = vld [vmem:[%s4572_s8 + $0x48] sm:$0xf0]  ;;  %v2791_v6 = vor.u32 %v3365_v61, %v2788_v62  ;;  %v3395_v61 = vld [vmem:[%s4574_s10 + $0x98] sm:$0xff]  ;;  %v3378_v62 = vld [vmem:[%s4574_s10 + $0x10] sm:$0xff] }
 0x2c8   : > { %v658_v20 = vpack.c.bf16 %v657_v16, %v657_v16  ;;  %1095 = vmatpush.bf16.msrb.mxu2 %v2755_v63  ;;  %v2695_v15 = vor.u32 %v3345_v13, %v2692_v14  ;;  %v2715_v13 = vor.u32 %v3356_v3, %v2714_v2  ;;  %v3377_v2 = vld [vmem:[%s4574_s10 + $0x8] sm:$0xff] }
 0x2c9   : > { %v797_v47 = vsub.f32 1.0, %v796_v46  ;;  %v3401_v3 = vld [vmem:[%s4574_s10 + $0xc8] sm:$0xff] }
 0x2ca   : > { %1109 = vmatpush.bf16.msrb.mxu0 %v2695_v15  ;;  %v2723_v15 = vor.u32 %v3357_v10, %v2722_v9  ;;  %v3415_v9 = vld [vmem:[%s4574_s10 + $0x138] sm:$0xff] }
 0x2cb   : > { %v798_v48 = vmul.f32 %v3582_v45, %v797_v47  ;;  %v3439_v10 = vld [vmem:[%s4574_s10 + $0x1f8] sm:$0xff] }
 0x2cc   : > { %1096 = vmatpush.bf16.msrb.mxu2 %v2691_v12  ;;  %v2724_v12 = vld [vmem:[%s4572_s8 + $0x68] sm:$0xf0] }
 0x2cd   : > { %v799_v49 = vadd.f32 %v3582_v45, %v798_v48 }
 0x2cf   : > { %v3861_v50 = vsel %vm800_vm5, %v3582_v45, %v799_v49  ;;  %v3560_v49 = vld [vmem:[%s4570_s6] ss:$0 sm:$0xff] }
 0x2d0   : > { %v660_v18 = vpop.permute.xlu0 %659 }
 0x2d1   : > { %2670 = vmatmul.msk.bf16.vlgmr.msra.gmra.mxu2 %vm511_vm1, %v715_v17  ;;  %v665_v19 = vsel %vm549_vm2, %v660_v18, 0  ;;  %v2762_v17 = vld [vmem:[%s4572_s8 + $0x90] sm:$0xf] }
 0x2d2   : > { %674 = vmatpush.bf16.msrb.mxu1 %v665_v19  ;;  %v3370_v18 = vld [vmem:[%s4572_s8 + $0xcc] sm:$0xf0]  ;;  %v3362_v19 = vld [vmem:[%s4572_s8 + $0x94] sm:$0xf] }
 0x2d5   : > { %2668 = vmatmul.msk.bf16.vlgmr.msrb.gmra.mxu1 %vm511_vm1, %v658_v20 }
 0x2d6   : > { %1069 = vmatpush.bf16.msra.mxu1 %v2747_v58  ;;  %v2780_v58 = vld [vmem:[%s4572_s8 + $0xe0] sm:$0xf0] }
 0x2d7   : > { %v2783_v1 = vor.u32 %v3364_v57, %v2780_v58  ;;  %v3396_v57 = vld [vmem:[%s4574_s10 + $0xa0] sm:$0xff]  ;;  %v3379_v58 = vld [vmem:[%s4574_s10 + $0x18] sm:$0xff] }
 0x2da   : > { %1070 = vmatpush.bf16.msra.mxu1 %v2683_v7  ;;  %v3348_v7 = vld [vmem:[%s4572_s8 + $0x24] sm:$0xf] }
 0x2db   : > { %v2719_v14 = vor.u32 %v3348_v7, %v2716_v8  ;;  %v3376_v7 = vld [vmem:[%s4574_s10] sm:$0xff] }
 0x2dc   : > { %v3400_v8 = vld [vmem:[%s4574_s10 + $0xc0] sm:$0xff] }
 0x326   : > { %v562_v21 = vpop.f32.mrf.mxu2 }
 0x32e   : > { %v564_v22 = vpop.f32.mrf.mxu2 }
 0x32f   : > { %v2764_v22 = vld [vmem:[%s4572_s8 + $0xd0] sm:$0xf0] }
 0x344   : > { %v619_v23 = vpop.f32.mrf.mxu2 }
 0x345   : > { %738 = vrot.lane.b32.xlu1 %v619_v23, %s3662_s15  ;;  %v2770_v23 = vld [vmem:[%s4572_s8 + $0x98] sm:$0xf]  ;;  %s2584_s15 = scalar_lea.hbm %s4578_s14, %s3337_s0 }
 0x346   : > { %s2588_s27 = sshll.u32 %s2584_s15, 4  ;;  %s2589_s27 = int_to_ptr.hbm [resolvable:$true] %s2588_s27 }
 0x347   : > { %s3601_s21 = sshra.s32 %s2589_s27, 4  ;;  %s3602_s21 = int_to_ptr.hbm [resolvable:$true] %s3601_s21 }
 0x348   : > { %s3603_s0 = scalar_lea.hbm %s3602_s21, 8  ;;  %p3608_p0 = scmp.lt.s32.totalorder %s3602_s21, %s4578_s14 }
 0x349   : > { %p3604_p11 = scmp.ne.s32.totalorder %s3602_s21, %s3603_s0  ;;  %p3609_p1 = scmp.lt.s32.totalorder %s3607_s18, %s3603_s0 }
 0x34b   : > { %p3605_p12 = pnand %p3604_p11, %p3779_p5  ;;  %p3610_p2 = por %p3609_p1, %p3608_p0 }
 0x34c   : > { %v621_v24 = vpop.f32.mrf.mxu2 }
 0x34d   : > { %v3371_v24 = vld [vmem:[%s4572_s8 + $0xd4] sm:$0xf0]  ;;  %p3606_p13 = pneg %p3605_p12 }
 0x34f   : > { %p3611_p3 = pnand %p3610_p2, %p3606_p13 }
 0x352   : > { %v676_v25 = vpop.f32.mrf.mxu1 }
 0x353   : > { %742 = vrot.lane.b32.xlu2 %v676_v25, %s3663_s19  ;;  %v2767_v25 = vor.u32 %v3362_v19, %v2764_v22  ;;  %v3366_v19 = vld [vmem:[%s4572_s8 + $0xb4] sm:$0xf]  ;;  %v3375_v22 = vld [vmem:[%s4572_s8 + $0xf4] sm:$0xf0] }
 0x354   : > { %v733_v26 = vpop.f32.mrf.mxu2 }
 0x355   : > { %746 = vrot.lane.b32.xlu1 %v733_v26, %s3664_s22  ;;  %v2771_v26 = vor.u32 %v3371_v24, %v2770_v23  ;;  %1134 = vmatpush.bf16.msrb.mxu3 %v2767_v25  ;;  %v3367_v23 = vld [vmem:[%s4572_s8 + $0xbc] sm:$0xf] }
 0x356   : > { %v2804_v24 = vld [vmem:[%s4572_s8 + $0xf8] sm:$0xf0] }
 0x357   : > { %1147 = vmatpush.bf16.msra.mxu2 %v2771_v26 }
 0x35a   : > { %v678_v27 = vpop.f32.mrf.mxu1 }
 0x35b   : > { %v3363_v27 = vld [vmem:[%s4572_s8 + $0x9c] sm:$0xf] }
 0x35c   : > { %v735_v28 = vpop.f32.mrf.mxu2 }
 0x35d   : > { %v2772_v28 = vld [vmem:[%s4572_s8 + $0xd8] sm:$0xf0] }
 0x3ad   : > { %v743_v33 = vpop.permute.xlu2 %742 }
 0x3b7   : > { %v739_v31 = vpop.permute.xlu1 %738 }
 0x3b8   : > { %v749_v32 = vsel %vm511_vm1, %v562_v21, %v739_v31  ;;  %v2763_v21 = vor.u32 %v3370_v18, %v2762_v17  ;;  %v2775_v31 = vor.u32 %v3363_v27, %v2772_v28  ;;  %v2794_v17 = vld [vmem:[%s4572_s8 + $0xb0] sm:$0xf] }
 0x3b9   : > { %v751_v35 = vsel %vm750_vm3, %v749_v32, %v743_v33  ;;  %v3354_v32 = vld [vmem:[%s4572_s8 + $0x4c] sm:$0xf0]  ;;  %v3346_v33 = vld [vmem:[%s4572_s8 + $0x14] sm:$0xf] }
 0x3ba   : > { %1121 = vmatpush.bf16.msrb.mxu1 %v2763_v21  ;;  %v3374_v18 = vld [vmem:[%s4572_s8 + $0xec] sm:$0xf0]  ;;  %v2802_v21 = vld [vmem:[%s4572_s8 + $0xb8] sm:$0xf] }
 0x3bb   : > { %v2795_v25 = vor.u32 %v3374_v18, %v2794_v17  ;;  %v2730_v27 = vld [vmem:[%s4572_s8 + $0x30] sm:$0xf] }
 0x3bc   : > { %v3358_v28 = vld [vmem:[%s4572_s8 + $0x6c] sm:$0xf0] }
 0x3bd   : > { %v3422_v17 = vld [vmem:[%s4574_s10 + $0x170] sm:$0xff] }
 0x3be   : > { %v3430_v18 = vld [vmem:[%s4574_s10 + $0x1b0] sm:$0xff] }
 0x3c7   : > { %v747_v34 = vpop.permute.xlu1 %746 }
 0x3c8   : > { %v753_v36 = vsel %vm752_vm4, %v751_v35, %v747_v34  ;;  %v2699_v34 = vor.u32 %v3354_v32, %v2698_v29  ;;  %v2700_v35 = vld [vmem:[%s4572_s8 + $0x50] sm:$0xf0]  ;;  %v2803_v29 = vor.u32 %v3375_v22, %v2802_v21  ;;  %v3421_v21 = vld [vmem:[%s4574_s10 + $0x168] sm:$0xff] }
 0x3c9   : > { %v754_v37 = vpack.c.bf16 %v753_v36, %v753_v36  ;;  %v2706_v36 = vld [vmem:[%s4572_s8 + $0x18] sm:$0xf]  ;;  %v2732_v32 = vld [vmem:[%s4572_s8 + $0x70] sm:$0xf0]  ;;  %v3429_v22 = vld [vmem:[%s4574_s10 + $0x1a8] sm:$0xff] }
 0x3ca   : > { %1122 = vmatpush.bf16.msrb.mxu1 %v2699_v34  ;;  %v3359_v34 = vld [vmem:[%s4572_s8 + $0x74] sm:$0xf0] }
 0x3cb   : > { %2679 = vmatmul.msk.bf16.vlgmr.msra.gmra.mxu0 %vm488_vm0, %v754_v37  ;;  %v3355_v37 = vld [vmem:[%s4572_s8 + $0x54] sm:$0xf0] }
 0x3cc   : > { %1160 = vmatpush.bf16.msra.mxu0 %v2775_v31  ;;  %v3350_v31 = vld [vmem:[%s4572_s8 + $0x34] sm:$0xf] }
 0x448   : > { %v787_v39 = vpop.f32.mrf.mxu0 }
 0x449   : > { %v788_v40 = vadd.f32 %v3559_v38, %v787_v39  ;;  %v2703_v38 = vor.u32 %v3346_v33, %v2700_v35  ;;  %v2707_v39 = vor.u32 %v3355_v37, %v2706_v36  ;;  %v2738_v33 = vld [vmem:[%s4572_s8 + $0x38] sm:$0xf]  ;;  %v3351_v35 = vld [vmem:[%s4572_s8 + $0x3c] sm:$0xf]  ;;  %v2731_v37 = vor.u32 %v3358_v28, %v2730_v27 }
 0x44a   : > { %v2740_v36 = vld [vmem:[%s4572_s8 + $0x78] sm:$0xf0] }
 0x44b   : > { %v791_v41 = vadd.f32 %v788_v40, %v3803_v4  ;;  %v3347_v40 = vld [vmem:[%s4572_s8 + $0x1c] sm:$0xf]  ;;  %1135 = vmatpush.bf16.msrb.mxu3 %v2703_v38  ;;  %1148 = vmatpush.bf16.msra.mxu2 %v2707_v39  ;;  %v2735_v38 = vor.u32 %v3350_v31, %v2732_v32  ;;  %v2739_v39 = vor.u32 %v3359_v34, %v2738_v33  ;;  %v3409_v33 = vld [vmem:[%s4574_s10 + $0x108] sm:$0xff] }
 0x44c   : > { %v3411_v27 = vld [vmem:[%s4574_s10 + $0x118] sm:$0xff]  ;;  %v3433_v34 = vld [vmem:[%s4574_s10 + $0x1c8] sm:$0xff] }
 0x44d   : > { %v792_v42 = vsel %vm488_vm0, %v791_v41, 0.0  ;;  %v3435_v28 = vld [vmem:[%s4574_s10 + $0x1d8] sm:$0xff] }
 0x44e   : > { %793 = vadd.xlane.f32.xlu2 %v792_v42  ;;  %v3419_v31 = vld [vmem:[%s4574_s10 + $0x158] sm:$0xff] }
 0x44f   : > { %v3427_v32 = vld [vmem:[%s4574_s10 + $0x198] sm:$0xff] }
 0x450   : > { %v789_v43 = vpop.f32.mrf.mxu0 }
 0x4c1   : > { %v794_v51 = vpop.xlane.xlu2 %793 }
 0x4c2   : > { %v802_v52 = vmul.f32 %v3861_v50, %v794_v51 }
 0x4c4   : > { %v3864_v53 = vsub.f32 %v791_v41, %v802_v52  ;;  %v2708_v41 = vld [vmem:[%s4572_s8 + $0x58] sm:$0xf0]  ;;  %v3561_v52 = vld [vmem:[%s4571_s7] ss:$0 sm:$0xff] }
 0x4c5   : > { %v2711_v42 = vor.u32 %v3347_v40, %v2708_v41  ;;  %v2743_v40 = vor.u32 %v3351_v35, %v2740_v36  ;;  %v3383_v41 = vld [vmem:[%s4574_s10 + $0x38] sm:$0xff]  ;;  %v3418_v35 = vld [vmem:[%s4574_s10 + $0x150] sm:$0xff] }
 0x4c6   : > { %v804_v4 = vmul.f32 %v3864_v53, %v3864_v53  ;;  %v3426_v36 = vld [vmem:[%s4574_s10 + $0x190] sm:$0xff] }
 0x4c7   : > { %1161 = vmatpush.bf16.msra.mxu0 %v2711_v42  ;;  %v3407_v42 = vld [vmem:[%s4574_s10 + $0xf8] sm:$0xff] }
 0x4c8   : > { %v805_v54 = vsel %vm488_vm0, %v804_v4, 0.0 }
 0x4c9   : > { %806 = vadd.xlane.f32.xlu1 %v805_v54 }
 0x53c   : > { %v807_v16 = vpop.xlane.xlu1 %806 }
 0x53d   : > { %v808_v20 = vmul.f32 %v807_v16, %v3861_v50  ;;  %v2727_v16 = vor.u32 %v3349_v11, %v2724_v12  ;;  %v3384_v11 = vld [vmem:[%s4574_s10 + $0x40] sm:$0xff] }
 0x53e   : > { %v3392_v12 = vld [vmem:[%s4574_s10 + $0x80] sm:$0xff] }
 0x53f   : > { %v809_v30 = vadd.f32 1e-05, %v808_v20  ;;  %v2796_v20 = vld [vmem:[%s4572_s8 + $0xf0] sm:$0xf0] }
 0x540   : > { %v2799_v26 = vor.u32 %v3366_v19, %v2796_v20  ;;  %v3413_v19 = vld [vmem:[%s4574_s10 + $0x128] sm:$0xff] }
 0x541   : > { %3583 = vrsqrt.f32 %v809_v30  ;;  %vm816_vm7 = vweird.f32 %v809_v30  ;;  %v3437_v20 = vld [vmem:[%s4574_s10 + $0x1e8] sm:$0xff] }
 0x547   : > { %v3584_v43 = vpop.eup %3583 }
 0x548   : > { %v811_v44 = vmul.f32 %v3584_v43, %v809_v30  ;;  %vm817_vm6 = vweird.f32 %v3584_v43  ;;  %v2807_v30 = vor.u32 %v3367_v23, %v2804_v24  ;;  %v3412_v23 = vld [vmem:[%s4574_s10 + $0x120] sm:$0xff] }
 0x549   : > { %vm818_vm8 = vmor %vm816_vm7, %vm817_vm6  ;;  %v3436_v24 = vld [vmem:[%s4574_s10 + $0x1e0] sm:$0xff] }
 0x54a   : > { %v812_v45 = vmul.f32 %v3584_v43, %v811_v44  ;;  %v3399_v44 = vld [vmem:[%s4574_s10 + $0xb8] sm:$0xff] }
 0x54c   : > { %v813_v46 = vmul.f32 0.5, %v812_v45  ;;  %v3382_v45 = vld [vmem:[%s4574_s10 + $0x30] sm:$0xff] }
 0x54e   : > { %v814_v47 = vsub.f32 1.5, %v813_v46  ;;  %v3406_v46 = vld [vmem:[%s4574_s10 + $0xf0] sm:$0xff] }
 0x550   : > { %v815_v48 = vmul.f32 %v3584_v43, %v814_v47  ;;  %v3390_v47 = vld [vmem:[%s4574_s10 + $0x70] sm:$0xff] }
 0x552   : > { %v819_v51 = vsel %vm818_vm8, %v3584_v43, %v815_v48  ;;  %v3391_v43 = vld [vmem:[%s4574_s10 + $0x78] sm:$0xff]  ;;  %v3398_v48 = vld [vmem:[%s4574_s10 + $0xb0] sm:$0xff] }
 0x553   : > { %v820_v4 = vmul.f32 %v819_v51, %v3864_v53  ;;  %v2786_v53 = vld [vmem:[%s4572_s8 + $0xa8] sm:$0xf] }
 0x554   : > { %v2787_v5 = vor.u32 %v3373_v60, %v2786_v53  ;;  %v3405_v51 = vld [vmem:[%s4574_s10 + $0xe8] sm:$0xff]  ;;  %v3403_v53 = vld [vmem:[%s4574_s10 + $0xd8] sm:$0xff] }
 0x555   : > { %v825_v54 = vmul.f32 %v3560_v49, %v820_v4  ;;  %v3381_v49 = vld [vmem:[%s4574_s10 + $0x28] sm:$0xff]  ;;  %v3387_v60 = vld [vmem:[%s4574_s10 + $0x58] sm:$0xff] }
 0x556   : > { %v3397_v4 = vld [vmem:[%s4574_s10 + $0xa8] sm:$0xff] }
 0x557   : > { %v3988_v59 = vadd.f32 %v3561_v52, %v825_v54  ;;  %v3389_v52 = vld [vmem:[%s4574_s10 + $0x68] sm:$0xff]  ;;  %v3380_v54 = vld [vmem:[%s4574_s10 + $0x20] sm:$0xff] }
 0x559   : > { %v4001_v63 = vpack.c.bf16 %v3988_v59, %v3988_v59 }
 0x55b   : > { %2808 = vmatmul.msk.bf16.vlgmr.msra.gmra.mxu1 %vm488_vm0, %v4001_v63  ;;  %2809 = vmatmul.msk.bf16.vlgmr.msra.gmra.mxu3 %vm488_vm0, %v4001_v63 }
 0x55c   : > { %2810 = vmatmul.msk.bf16.vlgmr.msrb.gmra.mxu2 %vm488_vm0, %v4001_v63  ;;  %2811 = vmatmul.msk.bf16.vlgmr.msrb.gmra.mxu0 %vm488_vm0, %v4001_v63 }
 0x55d   : > { %1173 = vmatpush.bf16.msra.mxu1 %v2779_v0  ;;  %1186 = vmatpush.bf16.msra.mxu3 %v2783_v1  ;;  %v3402_v0 = vld [vmem:[%s4574_s10 + $0xd0] sm:$0xff] }
 0x55e   : > { %1199 = vmatpush.bf16.msrb.mxu2 %v2787_v5  ;;  %1212 = vmatpush.bf16.msrb.mxu0 %v2791_v6  ;;  %v3386_v1 = vld [vmem:[%s4574_s10 + $0x50] sm:$0xff]  ;;  %v3385_v5 = vld [vmem:[%s4574_s10 + $0x48] sm:$0xff] }
 0x55f   : > { %v3393_v6 = vld [vmem:[%s4574_s10 + $0x88] sm:$0xff] }
 0x561   : > { %1174 = vmatpush.bf16.msra.mxu1 %v2715_v13  ;;  %1187 = vmatpush.bf16.msra.mxu3 %v2719_v14  ;;  %v3423_v13 = vld [vmem:[%s4574_s10 + $0x178] sm:$0xff] }
 0x562   : > { %1200 = vmatpush.bf16.msrb.mxu2 %v2723_v15  ;;  %1213 = vmatpush.bf16.msrb.mxu0 %v2727_v16  ;;  %v3431_v14 = vld [vmem:[%s4574_s10 + $0x1b8] sm:$0xff]  ;;  %v3414_v15 = vld [vmem:[%s4574_s10 + $0x130] sm:$0xff] }
 0x563   : > { %v3438_v16 = vld [vmem:[%s4574_s10 + $0x1f0] sm:$0xff] }
 0x56b   : > { %2812 = vmatmul.msk.bf16.vlgmr.msrb.gmra.mxu1 %vm488_vm0, %v4001_v63  ;;  %2813 = vmatmul.msk.bf16.vlgmr.msrb.gmra.mxu3 %vm488_vm0, %v4001_v63 }
 0x56c   : > { %2814 = vmatmul.msk.bf16.vlgmr.msra.gmra.mxu2 %vm488_vm0, %v4001_v63  ;;  %2815 = vmatmul.msk.bf16.vlgmr.msra.gmra.mxu0 %vm488_vm0, %v4001_v63 }
 0x56d   : > { %1225 = vmatpush.bf16.msrb.mxu1 %v2795_v25  ;;  %1238 = vmatpush.bf16.msrb.mxu3 %v2799_v26  ;;  %v3420_v25 = vld [vmem:[%s4574_s10 + $0x160] sm:$0xff] }
 0x56e   : > { %1251 = vmatpush.bf16.msra.mxu2 %v2803_v29  ;;  %1264 = vmatpush.bf16.msra.mxu0 %v2807_v30  ;;  %v3428_v26 = vld [vmem:[%s4574_s10 + $0x1a0] sm:$0xff]  ;;  %v3410_v29 = vld [vmem:[%s4574_s10 + $0x110] sm:$0xff] }
 0x56f   : > { %v3434_v30 = vld [vmem:[%s4574_s10 + $0x1d0] sm:$0xff] }
 0x571   : > { %1226 = vmatpush.bf16.msrb.mxu1 %v2731_v37  ;;  %1239 = vmatpush.bf16.msrb.mxu3 %v2735_v38  ;;  %v3408_v37 = vld [vmem:[%s4574_s10 + $0x100] sm:$0xff] }
 0x572   : > { %1252 = vmatpush.bf16.msra.mxu2 %v2739_v39  ;;  %1265 = vmatpush.bf16.msra.mxu0 %v2743_v40  ;;  %v3432_v38 = vld [vmem:[%s4574_s10 + $0x1c0] sm:$0xff]  ;;  %v3417_v39 = vld [vmem:[%s4574_s10 + $0x148] sm:$0xff] }
 0x573   : > { %v3425_v40 = vld [vmem:[%s4574_s10 + $0x188] sm:$0xff] }
 0x57b   : > { %2816 = vmatmul.msk.bf16.vlgmr.msra.gmra.mxu1 %vm488_vm0, %v4001_v63  ;;  %2817 = vmatmul.msk.bf16.vlgmr.msra.gmra.mxu3 %vm488_vm0, %v4001_v63 }
 0x57c   : > { %2818 = vmatmul.msk.bf16.vlgmr.msrb.gmra.mxu2 %vm488_vm0, %v4001_v63  ;;  %2819 = vmatmul.msk.bf16.vlgmr.msrb.gmra.mxu0 %vm488_vm0, %v4001_v63 }
 0x57d   : > { %2331 = vmatpush.bf16.msra.mxu1 %v3383_v41  ;;  %2370 = vmatpush.bf16.msrb.mxu0 %v3407_v42  ;;  %v3416_v41 = vld [vmem:[%s4574_s10 + $0x140] sm:$0xff] }
 0x57e   : > { %2344 = vmatpush.bf16.msra.mxu3 %v3391_v43  ;;  %2357 = vmatpush.bf16.msrb.mxu2 %v3399_v44  ;;  %v3424_v42 = vld [vmem:[%s4574_s10 + $0x180] sm:$0xff] }
 0x57f   : > { %v4302_v43 = vld [vmem:[%s4573_s9] sm:$0xff] }
 0x580   : > { %v868_v44 = vperm.slane %v4302_v43, 0 }
 0x581   : > { %2332 = vmatpush.bf16.msra.mxu1 %v3382_v45  ;;  %2371 = vmatpush.bf16.msrb.mxu0 %v3406_v46  ;;  %v871_v45 = vperm.slane %v4302_v43, 3 }
 0x582   : > { %2345 = vmatpush.bf16.msra.mxu3 %v3390_v47  ;;  %2358 = vmatpush.bf16.msrb.mxu2 %v3398_v48 }
 0x585   : > { %2333 = vmatpush.bf16.msra.mxu1 %v3381_v49  ;;  %2372 = vmatpush.bf16.msrb.mxu0 %v3405_v51 }
 0x586   : > { %2346 = vmatpush.bf16.msra.mxu3 %v3389_v52  ;;  %2359 = vmatpush.bf16.msrb.mxu2 %v3397_v4  ;;  %v869_v52 = vperm.slane %v4302_v43, 1 }
 0x589   : > { %2334 = vmatpush.bf16.msra.mxu1 %v3380_v54  ;;  %2373 = vmatpush.bf16.msrb.mxu0 %v3404_v55  ;;  %v870_v54 = vperm.slane %v4302_v43, 2  ;;  %v3447_v55 = vld [vmem:[%s4574_s10 + $0x238] sm:$0xff] }
 0x58a   : > { %2347 = vmatpush.bf16.msra.mxu3 %v3388_v56  ;;  %2360 = vmatpush.bf16.msrb.mxu2 %v3396_v57  ;;  %v3471_v57 = vld [vmem:[%s4574_s10 + $0x2f8] sm:$0xff] }
 0x58b   : > { %2820 = vmatmul.msk.bf16.vlgmr.msrb.gmra.mxu1 %vm488_vm0, %v4001_v63  ;;  %2821 = vmatmul.msk.bf16.vlgmr.msrb.gmra.mxu3 %vm488_vm0, %v4001_v63 }
 0x58c   : > { %2822 = vmatmul.msk.bf16.vlgmr.msra.gmra.mxu2 %vm488_vm0, %v4001_v63  ;;  %2823 = vmatmul.msk.bf16.vlgmr.msra.gmra.mxu0 %vm488_vm0, %v4001_v63  ;;  %v3394_v63 = vld [vmem:[%s4574_s10 + $0x90] sm:$0xff] }
 0x58d   : > { %2335 = vmatpush.bf16.msra.mxu1 %v3379_v58  ;;  %2374 = vmatpush.bf16.msrb.mxu0 %v3403_v53 }
 0x58e   : > { %2348 = vmatpush.bf16.msra.mxu3 %v3387_v60  ;;  %2361 = vmatpush.bf16.msrb.mxu2 %v3395_v61 }
 0x591   : > { %2336 = vmatpush.bf16.msra.mxu1 %v3378_v62  ;;  %2375 = vmatpush.bf16.msrb.mxu0 %v3402_v0 }
 0x592   : > { %2349 = vmatpush.bf16.msra.mxu3 %v3386_v1  ;;  %2362 = vmatpush.bf16.msrb.mxu2 %v3394_v63  ;;  %v3446_v1 = vld [vmem:[%s4574_s10 + $0x230] sm:$0xff] }
 0x595   : > { %2337 = vmatpush.bf16.msra.mxu1 %v3377_v2  ;;  %2376 = vmatpush.bf16.msrb.mxu0 %v3401_v3  ;;  %v3470_v3 = vld [vmem:[%s4574_s10 + $0x2f0] sm:$0xff] }
 0x596   : > { %2350 = vmatpush.bf16.msra.mxu3 %v3385_v5  ;;  %2363 = vmatpush.bf16.msrb.mxu2 %v3393_v6  ;;  %v3455_v6 = vld [vmem:[%s4574_s10 + $0x278] sm:$0xff] }
 0x599   : > { %2338 = vmatpush.bf16.msra.mxu1 %v3376_v7  ;;  %2377 = vmatpush.bf16.msrb.mxu0 %v3400_v8  ;;  %v3463_v8 = vld [vmem:[%s4574_s10 + $0x2b8] sm:$0xff] }
 0x59a   : > { %2351 = vmatpush.bf16.msra.mxu3 %v3384_v11  ;;  %2364 = vmatpush.bf16.msrb.mxu2 %v3392_v12  ;;  %v3469_v11 = vld [vmem:[%s4574_s10 + $0x2e8] sm:$0xff]  ;;  %v872_v12 = vperm.slane %v4302_v43, 4 }
 0x59d   : > { %2383 = vmatpush.bf16.msrb.mxu1 %v3415_v9  ;;  %2422 = vmatpush.bf16.msra.mxu0 %v3439_v10  ;;  %v3445_v10 = vld [vmem:[%s4574_s10 + $0x228] sm:$0xff] }
 0x59e   : > { %2396 = vmatpush.bf16.msrb.mxu3 %v3423_v13  ;;  %2409 = vmatpush.bf16.msra.mxu2 %v3431_v14  ;;  %v875_v14 = vperm.slane %v4302_v43, 7 }
 0x5a1   : > { %2384 = vmatpush.bf16.msrb.mxu1 %v3414_v15  ;;  %2423 = vmatpush.bf16.msra.mxu0 %v3438_v16  ;;  %v3454_v15 = vld [vmem:[%s4574_s10 + $0x270] sm:$0xff] }
 0x5a2   : > { %2397 = vmatpush.bf16.msrb.mxu3 %v3422_v17  ;;  %2410 = vmatpush.bf16.msra.mxu2 %v3430_v18  ;;  %v3462_v17 = vld [vmem:[%s4574_s10 + $0x2b0] sm:$0xff] }
 0x5a5   : > { %2385 = vmatpush.bf16.msrb.mxu1 %v3413_v19  ;;  %2424 = vmatpush.bf16.msra.mxu0 %v3437_v20  ;;  %v3444_v19 = vld [vmem:[%s4574_s10 + $0x220] sm:$0xff] }
 0x5a6   : > { %2398 = vmatpush.bf16.msrb.mxu3 %v3421_v21  ;;  %2411 = vmatpush.bf16.msra.mxu2 %v3429_v22  ;;  %v3468_v22 = vld [vmem:[%s4574_s10 + $0x2e0] sm:$0xff] }
 0x5a9   : > { %2386 = vmatpush.bf16.msrb.mxu1 %v3412_v23  ;;  %2425 = vmatpush.bf16.msra.mxu0 %v3436_v24  ;;  %v3453_v24 = vld [vmem:[%s4574_s10 + $0x268] sm:$0xff] }
 0x5aa   : > { %2399 = vmatpush.bf16.msrb.mxu3 %v3420_v25  ;;  %2412 = vmatpush.bf16.msra.mxu2 %v3428_v26  ;;  %v3461_v26 = vld [vmem:[%s4574_s10 + $0x2a8] sm:$0xff] }
 0x5ad   : > { %2387 = vmatpush.bf16.msrb.mxu1 %v3411_v27  ;;  %2426 = vmatpush.bf16.msra.mxu0 %v3435_v28  ;;  %v873_v27 = vperm.slane %v4302_v43, 5 }
 0x5ae   : > { %2400 = vmatpush.bf16.msrb.mxu3 %v3419_v31  ;;  %2413 = vmatpush.bf16.msra.mxu2 %v3427_v32  ;;  %v3467_v32 = vld [vmem:[%s4574_s10 + $0x2d8] sm:$0xff] }
 0x5b1   : > { %2388 = vmatpush.bf16.msrb.mxu1 %v3410_v29  ;;  %2427 = vmatpush.bf16.msra.mxu0 %v3434_v30  ;;  %v874_v29 = vperm.slane %v4302_v43, 6  ;;  %v3443_v30 = vld [vmem:[%s4574_s10 + $0x218] sm:$0xff] }
 0x5b2   : > { %2401 = vmatpush.bf16.msrb.mxu3 %v3418_v35  ;;  %2414 = vmatpush.bf16.msra.mxu2 %v3426_v36  ;;  %v3452_v35 = vld [vmem:[%s4574_s10 + $0x260] sm:$0xff] }
 0x5b5   : > { %2389 = vmatpush.bf16.msrb.mxu1 %v3409_v33  ;;  %2428 = vmatpush.bf16.msra.mxu0 %v3433_v34 }
 0x5b6   : > { %2402 = vmatpush.bf16.msrb.mxu3 %v3417_v39  ;;  %2415 = vmatpush.bf16.msra.mxu2 %v3425_v40 }
 0x5b9   : > { %2390 = vmatpush.bf16.msrb.mxu1 %v3408_v37  ;;  %2429 = vmatpush.bf16.msra.mxu0 %v3432_v38  ;;  %v3460_v38 = vld [vmem:[%s4574_s10 + $0x2a0] sm:$0xff] }
 0x5ba   : > { %2403 = vmatpush.bf16.msrb.mxu3 %v3416_v41  ;;  %2416 = vmatpush.bf16.msra.mxu2 %v3424_v42  ;;  %v3442_v41 = vld [vmem:[%s4574_s10 + $0x210] sm:$0xff] }
 0x5d8   : > { %v1072_v46 = vpop.f32.mrf.mxu1 }
 0x5d9   : > { %v1073_v47 = vadd.f32 %v1072_v46, %v868_v44  ;;  %v1111_v48 = vpop.f32.mrf.mxu0  ;;  %v3466_v44 = vld [vmem:[%s4574_s10 + $0x2d0] sm:$0xff]  ;;  %v3451_v46 = vld [vmem:[%s4574_s10 + $0x258] sm:$0xff] }
 0x5da   : > { %v1112_v49 = vadd.f32 %v1111_v48, %v871_v45 }
 0x5db   : > { %v1271_v51 = vmax.f32 %v1073_v47, 0.0  ;;  %v4378_v47 = vld [vmem:[%s4573_s9 + $0x8] sm:$0xff] }
 0x5dc   : > { %v1274_v4 = vmax.f32 %v1112_v49, 0.0  ;;  %v3459_v49 = vld [vmem:[%s4574_s10 + $0x298] sm:$0xff] }
 0x5dd   : > { %v1287_v56 = vpack.c.bf16 %v1271_v51, %v1271_v51 }
 0x5de   : > { %v1290_v58 = vpack.c.bf16 %v1274_v4, %v1274_v4  ;;  %v1085_v53 = vpop.f32.mrf.mxu3  ;;  %v3465_v4 = vld [vmem:[%s4574_s10 + $0x2c8] sm:$0xff] }
 0x5df   : > { %v1086_v60 = vadd.f32 %v1085_v53, %v869_v52  ;;  %v1098_v61 = vpop.f32.mrf.mxu2  ;;  %2339 = vmatmul.bf16.vlgmr.msra.gmra.mxu1 %v1287_v56  ;;  %v3441_v52 = vld [vmem:[%s4574_s10 + $0x208] sm:$0xff]  ;;  %v879_v56 = vperm.slane %v4378_v47, 3  ;;  %v3458_v53 = vld [vmem:[%s4574_s10 + $0x290] sm:$0xff] }
 0x5e0   : > { %v1099_v62 = vadd.f32 %v1098_v61, %v870_v54  ;;  %2378 = vmatmul.bf16.vlgmr.msrb.gmra.mxu0 %v1290_v58  ;;  %2435 = vmatpush.bf16.msra.mxu1 %v3447_v55  ;;  %v1074_v0 = vpop.f32.mrf.mxu1  ;;  %v876_v54 = vperm.slane %v4378_v47, 0  ;;  %v3440_v61 = vld [vmem:[%s4574_s10 + $0x200] sm:$0xff] }
 0x5e1   : > { %v1272_v63 = vmax.f32 %v1086_v60, 0.0  ;;  %2474 = vmatpush.bf16.msrb.mxu0 %v3471_v57  ;;  %v1113_v2 = vpop.f32.mrf.mxu0  ;;  %v3450_v57 = vld [vmem:[%s4574_s10 + $0x250] sm:$0xff] }
 0x5e2   : > { %v1273_v5 = vmax.f32 %v1099_v62, 0.0 }
 0x5e3   : > { %v1288_v7 = vpack.c.bf16 %v1272_v63, %v1272_v63  ;;  %v3479_v63 = vld [vmem:[%s4574_s10 + $0x338] sm:$0xff] }
 0x5e4   : > { %v1289_v9 = vpack.c.bf16 %v1273_v5, %v1273_v5  ;;  %2436 = vmatpush.bf16.msra.mxu1 %v3446_v1  ;;  %v3464_v1 = vld [vmem:[%s4574_s10 + $0x2c0] sm:$0xff]  ;;  %v3449_v5 = vld [vmem:[%s4574_s10 + $0x248] sm:$0xff] }
 0x5e5   : > { %2475 = vmatpush.bf16.msrb.mxu0 %v3470_v3  ;;  %2352 = vmatmul.bf16.vlgmr.msra.gmra.mxu3 %v1288_v7  ;;  %v3503_v3 = vld [vmem:[%s4574_s10 + $0x3f8] sm:$0xff]  ;;  %v3457_v7 = vld [vmem:[%s4574_s10 + $0x288] sm:$0xff] }
 0x5e6   : > { %2365 = vmatmul.bf16.vlgmr.msrb.gmra.mxu2 %v1289_v9  ;;  %2448 = vmatpush.bf16.msra.mxu3 %v3455_v6  ;;  %v1087_v13 = vpop.f32.mrf.mxu3 }
 0x5e7   : > { %2461 = vmatpush.bf16.msrb.mxu2 %v3463_v8  ;;  %v1100_v16 = vpop.f32.mrf.mxu2  ;;  %v877_v8 = vperm.slane %v4378_v47, 1 }
 0x5e8   : > { %2437 = vmatpush.bf16.msra.mxu1 %v3445_v10  ;;  %v1124_v18 = vpop.f32.mrf.mxu1  ;;  %v878_v10 = vperm.slane %v4378_v47, 2  ;;  %v3448_v16 = vld [vmem:[%s4574_s10 + $0x240] sm:$0xff] }
 0x5e9   : > { %2476 = vmatpush.bf16.msrb.mxu0 %v3469_v11  ;;  %v1125_v20 = vadd.f32 %v1124_v18, %v872_v12  ;;  %v1163_v21 = vpop.f32.mrf.mxu0  ;;  %v3478_v12 = vld [vmem:[%s4574_s10 + $0x330] sm:$0xff] }
 0x5ea   : > { %v1164_v23 = vadd.f32 %v1163_v21, %v875_v14  ;;  %2449 = vmatpush.bf16.msra.mxu3 %v3454_v15  ;;  %v3502_v15 = vld [vmem:[%s4574_s10 + $0x3f0] sm:$0xff] }
 0x5eb   : > { %v1275_v25 = vmax.f32 %v1125_v20, 0.0  ;;  %2462 = vmatpush.bf16.msrb.mxu2 %v3462_v17  ;;  %v3487_v20 = vld [vmem:[%s4574_s10 + $0x378] sm:$0xff] }
 0x5ec   : > { %v1278_v28 = vmax.f32 %v1164_v23, 0.0  ;;  %2438 = vmatpush.bf16.msra.mxu1 %v3444_v19  ;;  %v3456_v19 = vld [vmem:[%s4574_s10 + $0x280] sm:$0xff]  ;;  %v3495_v23 = vld [vmem:[%s4574_s10 + $0x3b8] sm:$0xff] }
 0x5ed   : > { %v1291_v31 = vpack.c.bf16 %v1275_v25, %v1275_v25  ;;  %2477 = vmatpush.bf16.msrb.mxu0 %v3468_v22 }
 0x5ee   : > { %v1294_v33 = vpack.c.bf16 %v1278_v28, %v1278_v28  ;;  %2450 = vmatpush.bf16.msra.mxu3 %v3453_v24  ;;  %v1137_v34 = vpop.f32.mrf.mxu3  ;;  %v3501_v28 = vld [vmem:[%s4574_s10 + $0x3e8] sm:$0xff] }
 0x5ef   : > { %2463 = vmatpush.bf16.msrb.mxu2 %v3461_v26  ;;  %v1138_v36 = vadd.f32 %v1137_v34, %v873_v27  ;;  %v1150_v37 = vpop.f32.mrf.mxu2  ;;  %2391 = vmatmul.bf16.vlgmr.msrb.gmra.mxu1 %v1291_v31  ;;  %v3477_v26 = vld [vmem:[%s4574_s10 + $0x328] sm:$0xff] }
 0x5f0   : > { %v1151_v39 = vadd.f32 %v1150_v37, %v874_v29  ;;  %2430 = vmatmul.bf16.vlgmr.msra.gmra.mxu0 %v1294_v33  ;;  %2439 = vmatpush.bf16.msra.mxu1 %v3443_v30  ;;  %v1126_v40 = vpop.f32.mrf.mxu1  ;;  %v3486_v30 = vld [vmem:[%s4574_s10 + $0x370] sm:$0xff]  ;;  %v3476_v33 = vld [vmem:[%s4574_s10 + $0x320] sm:$0xff]  ;;  %v3485_v37 = vld [vmem:[%s4574_s10 + $0x368] sm:$0xff] }
 0x5f1   : > { %v1276_v42 = vmax.f32 %v1138_v36, 0.0  ;;  %2478 = vmatpush.bf16.msrb.mxu0 %v3467_v32  ;;  %v1165_v43 = vpop.f32.mrf.mxu0  ;;  %v3494_v32 = vld [vmem:[%s4574_s10 + $0x3b0] sm:$0xff] }
 0x5f2   : > { %v1277_v45 = vmax.f32 %v1151_v39, 0.0  ;;  %2451 = vmatpush.bf16.msra.mxu3 %v3452_v35  ;;  %v3500_v35 = vld [vmem:[%s4574_s10 + $0x3e0] sm:$0xff]  ;;  %v3493_v39 = vld [vmem:[%s4574_s10 + $0x3a8] sm:$0xff] }
 0x5f3   : > { %v1292_v48 = vpack.c.bf16 %v1276_v42, %v1276_v42  ;;  %2464 = vmatpush.bf16.msrb.mxu2 %v3460_v38  ;;  %v3499_v42 = vld [vmem:[%s4574_s10 + $0x3d8] sm:$0xff]  ;;  %v3484_v43 = vld [vmem:[%s4574_s10 + $0x360] sm:$0xff] }
 0x5f4   : > { %v1293_v51 = vpack.c.bf16 %v1277_v45, %v1277_v45  ;;  %2440 = vmatpush.bf16.msra.mxu1 %v3442_v41  ;;  %v3475_v41 = vld [vmem:[%s4574_s10 + $0x318] sm:$0xff]  ;;  %v3474_v45 = vld [vmem:[%s4574_s10 + $0x310] sm:$0xff] }
 0x5f5   : > { %2479 = vmatpush.bf16.msrb.mxu0 %v3466_v44  ;;  %2404 = vmatmul.bf16.vlgmr.msrb.gmra.mxu3 %v1292_v48  ;;  %v3492_v44 = vld [vmem:[%s4574_s10 + $0x3a0] sm:$0xff] }
 0x5f6   : > { %2417 = vmatmul.bf16.vlgmr.msra.gmra.mxu2 %v1293_v51  ;;  %2452 = vmatpush.bf16.msra.mxu3 %v3451_v46  ;;  %v1139_v55 = vpop.f32.mrf.mxu3  ;;  %v880_v46 = vperm.slane %v4378_v47, 4  ;;  %v883_v51 = vperm.slane %v4378_v47, 7 }
 0x5f7   : > { %2465 = vmatpush.bf16.msrb.mxu2 %v3459_v49  ;;  %v1152_v58 = vpop.f32.mrf.mxu2  ;;  %v3498_v49 = vld [vmem:[%s4574_s10 + $0x3d0] sm:$0xff]  ;;  %v3491_v55 = vld [vmem:[%s4574_s10 + $0x398] sm:$0xff] }
 0x5f8   : > { %2441 = vmatpush.bf16.msra.mxu1 %v3441_v52  ;;  %v1176_v60 = vpop.f32.mrf.mxu1 }
 0x5f9   : > { %2480 = vmatpush.bf16.msrb.mxu0 %v3465_v4  ;;  %v1177_v62 = vadd.f32 %v1176_v60, %v876_v54  ;;  %v1215_v0 = vpop.f32.mrf.mxu0  ;;  %v3483_v4 = vld [vmem:[%s4574_s10 + $0x358] sm:$0xff] }
 0x5fa   : > { %v1216_v2 = vadd.f32 %v1215_v0, %v879_v56  ;;  %2453 = vmatpush.bf16.msra.mxu3 %v3450_v57  ;;  %v3473_v57 = vld [vmem:[%s4574_s10 + $0x308] sm:$0xff]  ;;  %v3490_v0 = vld [vmem:[%s4574_s10 + $0x390] sm:$0xff] }
 0x5fb   : > { %v1279_v6 = vmax.f32 %v1177_v62, 0.0  ;;  %2466 = vmatpush.bf16.msrb.mxu2 %v3458_v53  ;;  %v3497_v53 = vld [vmem:[%s4574_s10 + $0x3c8] sm:$0xff]  ;;  %v881_v62 = vperm.slane %v4378_v47, 5 }
 0x5fc   : > { %v1282_v9 = vmax.f32 %v1216_v2, 0.0  ;;  %2442 = vmatpush.bf16.msra.mxu1 %v3440_v61  ;;  %v3482_v61 = vld [vmem:[%s4574_s10 + $0x350] sm:$0xff] }
 0x5fd   : > { %v1295_v11 = vpack.c.bf16 %v1279_v6, %v1279_v6  ;;  %2481 = vmatpush.bf16.msrb.mxu0 %v3464_v1  ;;  %v882_v1 = vperm.slane %v4378_v47, 6 }
 0x5fe   : > { %v1298_v13 = vpack.c.bf16 %v1282_v9, %v1282_v9  ;;  %2454 = vmatpush.bf16.msra.mxu3 %v3449_v5  ;;  %v1189_v14 = vpop.f32.mrf.mxu3  ;;  %v3496_v5 = vld [vmem:[%s4574_s10 + $0x3c0] sm:$0xff]  ;;  %v3489_v9 = vld [vmem:[%s4574_s10 + $0x388] sm:$0xff] }
 0x5ff   : > { %2467 = vmatpush.bf16.msrb.mxu2 %v3457_v7  ;;  %v1190_v17 = vadd.f32 %v1189_v14, %v877_v8  ;;  %v1202_v18 = vpop.f32.mrf.mxu2  ;;  %2443 = vmatmul.bf16.vlgmr.msra.gmra.mxu1 %v1295_v11  ;;  %v3481_v8 = vld [vmem:[%s4574_s10 + $0x348] sm:$0xff] }
 0x600   : > { %2487 = vmatpush.bf16.msrb.mxu1 %v3479_v63  ;;  %v1203_v21 = vadd.f32 %v1202_v18, %v878_v10  ;;  %2482 = vmatmul.bf16.vlgmr.msrb.gmra.mxu0 %v1298_v13  ;;  %v1178_v22 = vpop.f32.mrf.mxu1  ;;  %v3472_v63 = vld [vmem:[%s4574_s10 + $0x300] sm:$0xff] }
 0x601   : > { %2526 = vmatpush.bf16.msra.mxu0 %v3503_v3  ;;  %v1280_v24 = vmax.f32 %v1190_v17, 0.0  ;;  %v1217_v25 = vpop.f32.mrf.mxu0  ;;  %v3480_v13 = vld [vmem:[%s4574_s10 + $0x340] sm:$0xff] }
 0x602   : > { %v1281_v27 = vmax.f32 %v1203_v21, 0.0  ;;  %2455 = vmatpush.bf16.msra.mxu3 %v3448_v16 }
 0x603   : > { %v1296_v29 = vpack.c.bf16 %v1280_v24, %v1280_v24  ;;  %2468 = vmatpush.bf16.msrb.mxu2 %v3456_v19 }
 0x604   : > { %2488 = vmatpush.bf16.msrb.mxu1 %v3478_v12  ;;  %v1297_v31 = vpack.c.bf16 %v1281_v27, %v1281_v27 }
 0x605   : > { %2527 = vmatpush.bf16.msra.mxu0 %v3502_v15  ;;  %2456 = vmatmul.bf16.vlgmr.msra.gmra.mxu3 %v1296_v29  ;;  %v3488_v15 = vld [vmem:[%s4574_s10 + $0x380] sm:$0xff] }
 0x606   : > { %2500 = vmatpush.bf16.msrb.mxu3 %v3487_v20  ;;  %2469 = vmatmul.bf16.vlgmr.msrb.gmra.mxu2 %v1297_v31  ;;  %v1191_v34 = vpop.f32.mrf.mxu3  ;;  %v3562_v31 = vld [vmem:[%s4575_s11] ss:$0 sm:$0xff] }
 0x607   : > { %2513 = vmatpush.bf16.msra.mxu2 %v3495_v23  ;;  %v1204_v36 = vpop.f32.mrf.mxu2 }
 0x608   : > { %2489 = vmatpush.bf16.msrb.mxu1 %v3477_v26  ;;  %v1228_v38 = vpop.f32.mrf.mxu1 }
 0x609   : > { %2528 = vmatpush.bf16.msra.mxu0 %v3501_v28  ;;  %v1267_v40 = vpop.f32.mrf.mxu0  ;;  %v1229_v58 = vadd.f32 %v1228_v38, %v880_v46 }
 0x60a   : > { %2501 = vmatpush.bf16.msrb.mxu3 %v3486_v30  ;;  %v1268_v60 = vadd.f32 %v1267_v40, %v883_v51 }
 0x60b   : > { %2514 = vmatpush.bf16.msra.mxu2 %v3494_v32  ;;  %v1283_v2 = vmax.f32 %v1229_v58, 0.0 }
 0x60c   : > { %2490 = vmatpush.bf16.msrb.mxu1 %v3476_v33  ;;  %v1286_v6 = vmax.f32 %v1268_v60, 0.0 }
 0x60d   : > { %2529 = vmatpush.bf16.msra.mxu0 %v3500_v35  ;;  %v1299_v11 = vpack.c.bf16 %v1283_v2, %v1283_v2 }
 0x60e   : > { %2502 = vmatpush.bf16.msrb.mxu3 %v3485_v37  ;;  %v1241_v48 = vpop.f32.mrf.mxu3  ;;  %v1302_v12 = vpack.c.bf16 %v1286_v6, %v1286_v6 }
 0x60f   : > { %2515 = vmatpush.bf16.msra.mxu2 %v3493_v39  ;;  %v1254_v52 = vpop.f32.mrf.mxu2  ;;  %v1242_v47 = vadd.f32 %v1241_v48, %v881_v62 }
 0x610   : > { %2491 = vmatpush.bf16.msrb.mxu1 %v3475_v41  ;;  %v1230_v54 = vpop.f32.mrf.mxu1  ;;  %v1255_v10 = vadd.f32 %v1254_v52, %v882_v1 }
 0x611   : > { %2530 = vmatpush.bf16.msra.mxu0 %v3499_v42  ;;  %v1269_v56 = vpop.f32.mrf.mxu0  ;;  %v1284_v14 = vmax.f32 %v1242_v47, 0.0 }
 0x612   : > { %2503 = vmatpush.bf16.msrb.mxu3 %v3484_v43  ;;  %v1285_v16 = vmax.f32 %v1255_v10, 0.0 }
 0x613   : > { %2516 = vmatpush.bf16.msra.mxu2 %v3492_v44  ;;  %v1300_v17 = vpack.c.bf16 %v1284_v14, %v1284_v14 }
 0x614   : > { %2492 = vmatpush.bf16.msrb.mxu1 %v3474_v45  ;;  %v1301_v18 = vpack.c.bf16 %v1285_v16, %v1285_v16 }
 0x615   : > { %2531 = vmatpush.bf16.msra.mxu0 %v3498_v49 }
 0x616   : > { %2504 = vmatpush.bf16.msrb.mxu3 %v3483_v4  ;;  %v1243_v3 = vpop.f32.mrf.mxu3 }
 0x617   : > { %2517 = vmatpush.bf16.msra.mxu2 %v3491_v55  ;;  %v1256_v7 = vpop.f32.mrf.mxu2 }
 0x618   : > { %2493 = vmatpush.bf16.msrb.mxu1 %v3473_v57 }
 0x619   : > { %2532 = vmatpush.bf16.msra.mxu0 %v3497_v53 }
 0x61a   : > { %2505 = vmatpush.bf16.msrb.mxu3 %v3482_v61 }
 0x61b   : > { %2518 = vmatpush.bf16.msra.mxu2 %v3490_v0 }
 0x61c   : > { %2494 = vmatpush.bf16.msrb.mxu1 %v3472_v63 }
 0x61d   : > { %2533 = vmatpush.bf16.msra.mxu0 %v3496_v5 }
 0x61e   : > { %2506 = vmatpush.bf16.msrb.mxu3 %v3481_v8 }
 0x61f   : > { %2519 = vmatpush.bf16.msra.mxu2 %v3489_v9  ;;  %2495 = vmatmul.bf16.vlgmr.msrb.gmra.mxu1 %v1299_v11 }
 0x620   : > { %2534 = vmatmul.bf16.vlgmr.msra.gmra.mxu0 %v1302_v12 }
 0x622   : > { %2507 = vmatpush.bf16.msrb.mxu3 %v3480_v13 }
 0x623   : > { %2520 = vmatpush.bf16.msra.mxu2 %v3488_v15 }
 0x625   : > { %2508 = vmatmul.bf16.vlgmr.msrb.gmra.mxu3 %v1300_v17 }
 0x626   : > { %2521 = vmatmul.bf16.vlgmr.msra.gmra.mxu2 %v1301_v18 }
 0x65c   : > { %v2340_v19 = vpop.f32.mrf.mxu1 }
 0x65d   : > { %v2379_v20 = vpop.f32.mrf.mxu0  ;;  %v2341_v34 = vadd.f32 %v3562_v31, %v2340_v19 }
 0x664   : > { %v2342_v21 = vpop.f32.mrf.mxu1 }
 0x665   : > { %v2381_v22 = vpop.f32.mrf.mxu0  ;;  %v3563_v21 = vld [vmem:[%s4576_s12] ss:$0 sm:$0xff] }
 0x668   : > { %v2353_v23 = vpop.f32.mrf.mxu3 }
 0x669   : > { %v2366_v24 = vpop.f32.mrf.mxu2  ;;  %v2354_v37 = vadd.f32 %v2353_v23, %v2341_v34  ;;  %v3564_v23 = vld [vmem:[%s4577_s13] ss:$0 sm:$0xff] }
 0x66b   : > { %v2367_v40 = vadd.f32 %v2366_v24, %v2354_v37 }
 0x66c   : > { %v2392_v25 = vpop.f32.mrf.mxu1 }
 0x66d   : > { %v2431_v26 = vpop.f32.mrf.mxu0  ;;  %v2380_v43 = vadd.f32 %v2379_v20, %v2367_v40 }
 0x66f   : > { %v2393_v46 = vadd.f32 %v2392_v25, %v2380_v43 }
 0x670   : > { %v2355_v27 = vpop.f32.mrf.mxu3 }
 0x671   : > { %v2368_v28 = vpop.f32.mrf.mxu2 }
 0x674   : > { %v2394_v29 = vpop.f32.mrf.mxu1 }
 0x675   : > { %v2433_v30 = vpop.f32.mrf.mxu0 }
 0x678   : > { %v2405_v32 = vpop.f32.mrf.mxu3 }
 0x679   : > { %v2418_v33 = vpop.f32.mrf.mxu2  ;;  %v2406_v48 = vadd.f32 %v2405_v32, %v2393_v46 }
 0x67b   : > { %v2419_v49 = vadd.f32 %v2418_v33, %v2406_v48 }
 0x67c   : > { %v2444_v35 = vpop.f32.mrf.mxu1 }
 0x67d   : > { %v2483_v36 = vpop.f32.mrf.mxu0  ;;  %v2432_v4 = vadd.f32 %v2431_v26, %v2419_v49 }
 0x67f   : > { %v2445_v54 = vadd.f32 %v2444_v35, %v2432_v4 }
 0x680   : > { %v2407_v38 = vpop.f32.mrf.mxu3 }
 0x681   : > { %v2420_v39 = vpop.f32.mrf.mxu2 }
 0x684   : > { %v2446_v41 = vpop.f32.mrf.mxu1 }
 0x685   : > { %v2485_v42 = vpop.f32.mrf.mxu0 }
 0x688   : > { %v2457_v44 = vpop.f32.mrf.mxu3 }
 0x689   : > { %v2470_v45 = vpop.f32.mrf.mxu2  ;;  %v2458_v56 = vadd.f32 %v2457_v44, %v2445_v54 }
 0x68b   : > { %v2471_v58 = vadd.f32 %v2470_v45, %v2458_v56 }
 0x68d   : > { %v2484_v60 = vadd.f32 %v2483_v36, %v2471_v58 }
 0x690   : > { %v2459_v51 = vpop.f32.mrf.mxu3 }
 0x691   : > { %v2472_v52 = vpop.f32.mrf.mxu2 }
 0x69c   : > { %v2496_v55 = vpop.f32.mrf.mxu1 }
 0x69d   : > { %v2535_v57 = vpop.f32.mrf.mxu0  ;;  %v2497_v62 = vadd.f32 %v2496_v55, %v2484_v60 }
 0x6a4   : > { %v2498_v53 = vpop.f32.mrf.mxu1 }
 0x6a5   : > { %v2537_v61 = vpop.f32.mrf.mxu0 }
 0x6a8   : > { %v2509_v0 = vpop.f32.mrf.mxu3 }
 0x6a9   : > { %v2510_v1 = vadd.f32 %v2509_v0, %v2497_v62  ;;  %v2522_v63 = vpop.f32.mrf.mxu2 }
 0x6ab   : > { %v2523_v2 = vadd.f32 %v2522_v63, %v2510_v1 }
 0x6ad   : > { %v2536_v3 = vadd.f32 %v2535_v57, %v2523_v2 }
 0x6af   : > { %v2539_v5 = vadd.f32 %v2536_v3, %v3988_v59 }
 0x6b0   : > { %v2511_v6 = vpop.f32.mrf.mxu3 }
 0x6b1   : > { %v2524_v7 = vpop.f32.mrf.mxu2  ;;  %v2540_v8 = vsel %vm488_vm0, %v2539_v5, 0.0 }
 0x6b2   : > { %2541 = vadd.xlane.f32.xlu0 %v2540_v8 }
 0x725   : > { %v2542_v47 = vpop.xlane.xlu0 %2541 }
 0x726   : > { %v2543_v9 = vmul.f32 %v2542_v47, %v3861_v50 }
 0x728   : > { %v2544_v10 = vsub.f32 %v2539_v5, %v2543_v9 }
 0x72a   : > { %v2545_v11 = vmul.f32 %v2544_v10, %v2544_v10 }
 0x72c   : > { %v2546_v12 = vsel %vm488_vm0, %v2545_v11, 0.0 }
 0x72d   : > { %2547 = vadd.xlane.f32.xlu2 %v2546_v12 }
 0x7a0   : > { %v2548_v13 = vpop.xlane.xlu2 %2547 }
 0x7a1   : > { %v2549_v14 = vmul.f32 %v2548_v13, %v3861_v50 }
 0x7a3   : > { %v2550_v15 = vadd.f32 1e-05, %v2549_v14 }
 0x7a5   : > { %3585 = vrsqrt.f32 %v2550_v15  ;;  %vm2557_vm10 = vweird.f32 %v2550_v15 }
 0x7ab   : > { %v3586_v59 = vpop.eup %3585 }
 0x7ac   : > { %v2552_v16 = vmul.f32 %v3586_v59, %v2550_v15  ;;  %vm2558_vm9 = vweird.f32 %v3586_v59 }
 0x7ad   : > { %vm2559_vm11 = vmor %vm2557_vm10, %vm2558_vm9 }
 0x7ae   : > { %v2553_v17 = vmul.f32 %v3586_v59, %v2552_v16 }
 0x7b0   : > { %v2554_v18 = vmul.f32 0.5, %v2553_v17 }
 0x7b2   : > { %v2555_v19 = vsub.f32 1.5, %v2554_v18 }
 0x7b4   : > { %v2556_v20 = vmul.f32 %v3586_v59, %v2555_v19 }
 0x7b6   : > { %v2560_v50 = vsel %vm2559_vm11, %v3586_v59, %v2556_v20 }
 0x7b7   : > { %v2561_v22 = vmul.f32 %v2560_v50, %v2544_v10 }
 0x7b9   : > { %v2566_v24 = vmul.f32 %v3563_v21, %v2561_v22 }
 0x7bb   : > { %v2571_v25 = vadd.f32 %v3564_v23, %v2566_v24 }
 0x7bd   : > { %2572 = vst.msk [vmem:[%s458_s24] sm:$0xff] %vm488_vm0, %v2571_v25 }
 0x7be   : > { %3614 = shalt.err (!%p3611_p3)
}
 0x7bf   : > { %3504 = dma.vmem_to_hbm [thread:$0]  (%p3779_p5), %s2587_s17, 128, %s2589_s27, %s2574_s20  }
 0x7c0 PF: > { %p3510_p4 = scmp.ge.s32.totalorder %s3649_s16, 2  ;;  %s2600_s22 = sand.u32 1, %s3637_s29  }
 0x7c1   : > { %s2601_s24 = scalar_lea.sflag [#allocation3], %s2600_s22 }
 0x7c2   : > { %p3507_p7 = pnand %p3510_p4, %p3783_p6 }
 0x7c4   : > { %p3508_p8 = pneg %p3507_p7 }
 0x7c6   : > { %3632 = dma.done.wait (%p3508_p8), %s2601_s24, 128  }
 0x7c7   : > { %3634 = vsyncadd (%p3508_p8), %s2601_s24, 4294967168  ;;  %s4592_s16 = sld [smem:[#allocation6_spill]]  ;;  %s4595_s29 = smov %s3641_s30 }
 0x7c8   : > { %s4593_s21 = sld [smem:[#allocation5_spill]] }
 0x7c9   : > { %s4594_s15 = sld [smem:[#allocation7_spill]] }
 0x7cd   : > { %p24_p9 = scmp.ge.s32.totalorder %s4592_s16, 4  }
 0x7ce   : > { %s4596_s30 = smov %s4593_s21 }
 0x7cf   :  { %26 = sbr.rel (!%p24_p9) target bundleno = 5 (0x5), region = 111 }
 0x7d4   :  { %2607 = vsyncpa [#allocation3], 1 }
 0x7d5   :  { %2609 = vsyncpa [#allocation3 + $0x1], 1 }

</bundles_post_ra>
